<compile_context>
chip_gen: v7x
topology: tpu7x:2x2x1
jax: 0.10.0
libtpu: 0.0.40
codegen_flags: <defaults>
</compile_context>

<pallas_src>
import jax
import jax.numpy as jnp
from jax.experimental import pallas as pl
from jax.experimental.pallas import tpu as pltpu


def _round_up(x, m):
    return (x + m - 1) // m * m


def _pick_tile_rows(h, wp, target_rows):
    """Largest divisor th of h such that th*wp <= target_rows (tile = th padded rows)."""
    th = 1
    for d in range(1, h + 1):
        if h % d == 0 and d * wp <= target_rows:
            th = d
    return th


def _conv_phase1_call(x_tiles, w9, *, tm, wp, w_real, cin, cp):
    """Phase 1: raw 3x3 conv (9 tap matmuls, bf16->f32) + masked BN partial sums."""
    t, r, _ = x_tiles.shape                       # r = tm + halo
    halo = 2 * wp + 2
    assert r == tm + halo

    def kernel(x_ref, w_ref, y_ref, s_ref, q_ref):
        # 9 shifted matmuls against the VMEM slab; f32 accumulation on the MXU.
        acc = jnp.zeros((tm, cp), jnp.float32)
        for kh in range(3):
            for kw in range(3):
                off = kh * wp + kw                              # static Python int
                tap = x_ref[0, off:off + tm, :]                 # (tm, cin) bf16
                acc = acc + jnp.dot(tap, w_ref[kh * 3 + kw],
                                    preferred_element_type=jnp.float32)
        y_ref[0] = acc
        # BN partials: only columns < W of each padded-width row are real outputs.
        col = jax.lax.broadcasted_iota(jnp.int32, (tm, 1), 0) % wp
        m = (col < w_real).astype(jnp.float32)
        s_ref[0] = jnp.sum(acc * m, axis=0, keepdims=True)
        q_ref[0] = jnp.sum(acc * acc * m, axis=0, keepdims=True)

    flops = 2 * t * tm * cp * 9 * cin
    bytes_accessed = (x_tiles.size * 2 + w9.size * 2
                      + t * tm * cp * 4 + 2 * t * cp * 4)
    return pl.pallas_call(
        kernel,
        out_shape=(
            jax.ShapeDtypeStruct((t, tm, cp), jnp.float32),     # raw conv output
            jax.ShapeDtypeStruct((t, 1, cp), jnp.float32),      # per-tile sum
            jax.ShapeDtypeStruct((t, 1, cp), jnp.float32),      # per-tile sum of squares
        ),
        grid_spec=pltpu.PrefetchScalarGridSpec(
            num_scalar_prefetch=0,
            grid=(t,),
            in_specs=[
                pl.BlockSpec((1, r, cin), lambda i: (i, 0, 0)),      # haloed slab tile
                pl.BlockSpec((9, cin, cp), lambda i: (0, 0, 0)),     # resident weights
            ],
            out_specs=(
                pl.BlockSpec((1, tm, cp), lambda i: (i, 0, 0)),
                pl.BlockSpec((1, 1, cp), lambda i: (i, 0, 0)),
                pl.BlockSpec((1, 1, cp), lambda i: (i, 0, 0)),
            ),
        ),
        compiler_params=pltpu.CompilerParams(
            dimension_semantics=("parallel",),
            vmem_limit_bytes=48 * 1024 * 1024),     # > scoped defaults, safe on v7x (64 MiB)
        cost_estimate=pl.CostEstimate(flops=flops, transcendentals=0,
                                      bytes_accessed=bytes_accessed),
    )(x_tiles, w9)


def _bn_relu_call(y_raw, scale, shift, *, out_dtype):
    """Phase 2: elementwise y*scale + shift -> ReLU, tiled over the same grid."""
    t, tm, cp = y_raw.shape
    out_bytes = t * tm * cp * jnp.dtype(out_dtype).itemsize

    def kernel(y_ref, sc_ref, sh_ref, o_ref):
        o_ref[0] = jnp.maximum(y_ref[0] * sc_ref[...] + sh_ref[...],
                               0.0).astype(o_ref.dtype)

    return pl.pallas_call(
        kernel,
        out_shape=jax.ShapeDtypeStruct((t, tm, cp), out_dtype),
        grid_spec=pltpu.PrefetchScalarGridSpec(
            num_scalar_prefetch=0,
            grid=(t,),
            in_specs=[
                pl.BlockSpec((1, tm, cp), lambda i: (i, 0, 0)),
                pl.BlockSpec((1, cp), lambda i: (0, 0)),             # resident
                pl.BlockSpec((1, cp), lambda i: (0, 0)),             # resident
            ],
            out_specs=pl.BlockSpec((1, tm, cp), lambda i: (i, 0, 0)),
        ),
        compiler_params=pltpu.CompilerParams(
            dimension_semantics=("parallel",),
            vmem_limit_bytes=48 * 1024 * 1024),
        cost_estimate=pl.CostEstimate(flops=2 * t * tm * cp, transcendentals=0,
                                      bytes_accessed=y_raw.size * 4 + out_bytes),
    )(y_raw, scale, shift)


def conv_bn_relu(x_nhwc, w_hwio, gamma, beta, *, out_dtype=jnp.float32,
                 tile_target_rows=512, eps=1e-5):
    """One (Conv3x3 pad=1 => train-mode BN => ReLU) block. NHWC in, NHWC out."""
    n, h, w, cin = x_nhwc.shape
    cout = w_hwio.shape[-1]
    cp = _round_up(cout, 128)                  # lane-dense output channels
    wp = w + 2                                 # padded width
    hp = h + 3                                 # 1 top pad, 1+1 bottom pad (halo slack)
    th = _pick_tile_rows(h, wp, tile_target_rows)
    tm = th * wp                               # output rows per tile (padded-width coords)
    num_t = h // th
    t = n * num_t
    halo = 2 * wp + 2

    # Pad spatially, flatten (row, col) per image, gather haloed row-tiles.
    xpad = jnp.pad(x_nhwc, ((0, 0), (1, 2), (1, 1), (0, 0)))
    xflat = xpad.reshape(n, hp * wp, cin)
    rows = (jnp.arange(num_t) * tm)[:, None] + jnp.arange(tm + halo)[None, :]
    x_tiles = xflat[:, rows, :].reshape(t, tm + halo, cin).astype(jnp.bfloat16)

    # Weights: HWIO -> (9, Cin, Cp), zero-padded channels, bf16 for the MXU.
    w9 = jnp.pad(w_hwio, ((0, 0), (0, 0), (0, 0), (0, cp - cout)))
    w9 = w9.reshape(9, cin, cp).astype(jnp.bfloat16)

    y_raw, psum, psq = _conv_phase1_call(x_tiles, w9, tm=tm, wp=wp, w_real=w,
                                         cin=cin, cp=cp)

    # Combine per-tile partials into batch statistics (tiny arrays, plain jnp).
    count = float(n * h * w)
    tot = jnp.sum(psum.reshape(t, cp), axis=0)
    tot2 = jnp.sum(psq.reshape(t, cp), axis=0)
    mean = tot / count
    var = jnp.maximum(tot2 / count - mean * mean, 0.0)       # biased variance
    gpad = jnp.pad(gamma.astype(jnp.float32), (0, cp - cout))
    bpad = jnp.pad(beta.astype(jnp.float32), (0, cp - cout))
    scale = gpad * jax.lax.rsqrt(var + eps)
    shift = bpad - mean * scale

    out = _bn_relu_call(y_raw, scale.reshape(1, cp), shift.reshape(1, cp),
                        out_dtype=out_dtype)
    # Drop garbage padded-width columns and padded channels.
    return out.reshape(n, h, wp, cp)[:, :, :w, :cout]


def double_conv(x_nchw, params, *, tile_target_rows=512):
    """DoubleConv forward. x: NCHW; params: [(w_hwio, bias, gamma, beta), ...]."""
    y = jnp.transpose(x_nchw, (0, 2, 3, 1)).astype(jnp.float32)
    n_layers = len(params)
    for li, (w, _bias, g, be) in enumerate(params):
        # _bias is intentionally unused in the kernel path: with train-mode BN right
        # after the conv, a per-channel pre-BN constant cancels exactly.
        last = li == n_layers - 1
        y = conv_bn_relu(y, w, g, be,
                         out_dtype=jnp.float32 if last else jnp.bfloat16,
                         tile_target_rows=tile_target_rows)
    return jnp.transpose(y, (0, 3, 1, 2)).astype(jnp.float32)


def _reference(x_nchw, params):
    # Pure-JAX f32 reference (conv + bias + train-mode BN + ReLU).
    y = jnp.transpose(x_nchw, (0, 2, 3, 1)).astype(jnp.float32)
    for (w, b, g, be) in params:
        y = jax.lax.conv_general_dilated(
            y, w, window_strides=(1, 1), padding="SAME",
            dimension_numbers=("NHWC", "HWIO", "NHWC"))
        y = y + b
        mean = jnp.mean(y, axis=(0, 1, 2), keepdims=True)
        var = jnp.mean((y - mean) ** 2, axis=(0, 1, 2), keepdims=True)
        y = (y - mean) * jax.lax.rsqrt(var + 1e-5) * g + be
        y = jnp.maximum(y, 0.0)
    return jnp.transpose(y, (0, 3, 1, 2))


if __name__ == "__main__":
    key = jax.random.PRNGKey(0)
    N, Cin, Cout, H, W = 2, 4, 8, 16, 16

    k1, k2, k3, k4, kx = jax.random.split(key, 5)
    # Conv weights in HWIO layout; BN gamma=1, beta=0 (PyTorch BatchNorm2d default init).
    w1 = jax.random.normal(k1, (3, 3, Cin, Cout), jnp.float32) * 0.1
    b1 = jax.random.normal(k2, (Cout,), jnp.float32) * 0.1
    w2 = jax.random.normal(k3, (3, 3, Cout, Cout), jnp.float32) * 0.1
    b2 = jax.random.normal(k4, (Cout,), jnp.float32) * 0.1
    g1 = jnp.ones((Cout,), jnp.float32); be1 = jnp.zeros((Cout,), jnp.float32)
    g2 = jnp.ones((Cout,), jnp.float32); be2 = jnp.zeros((Cout,), jnp.float32)
    params = [(w1, b1, g1, be1), (w2, b2, g2, be2)]

    x = jax.random.normal(kx, (N, Cin, H, W), jnp.float32)

    # Small tile target so the toy problem exercises multiple tiles per image
    # (cross-tile BN partial-sum accumulation + halo handling). Default is 512 rows.
    out = jax.block_until_ready(double_conv(x, params, tile_target_rows=160))
    ref = _reference(x, params)

    assert out.shape == (N, Cout, H, W), out.shape
    err = float(jnp.max(jnp.abs(out - ref)))
    # bf16 matmul operands (f32 accumulation) => loosened tolerance vs the f32 reference.
    assert err < 8e-2, f"max abs diff too large: {err}"
    print("KERNEL_OK")
</pallas_src>

<mosaic_0001>
module attributes {stable_mosaic.version = 11 : i64} {
  func.func @kernel(%arg0: i32, %arg1: memref<1x182x4xbf16, #tpu.memory_space<vmem>>, %arg2: memref<9x4x128xbf16, #tpu.memory_space<vmem>>, %arg3: memref<1x144x128xf32, #tpu.memory_space<vmem>>, %arg4: memref<1x1x128xf32, #tpu.memory_space<vmem>>, %arg5: memref<1x1x128xf32, #tpu.memory_space<vmem>>) attributes {dimension_semantics = [#tpu.dimension_semantics<parallel>], iteration_bounds = array<i64: 4>, scalar_prefetch = 0 : i64, scratch_operands = 0 : i64, tpu.core_type = #tpu.core_type<tc>, window_params = [{transform_indices = @transform_0, window_bounds = array<i64: 1, 182, 4>}, {pipeline_mode = #tpu.pipeline_mode<synchronous>, transform_indices = @transform_1, window_bounds = array<i64: 9, 4, 128>}, {transform_indices = @transform_2, window_bounds = array<i64: 1, 144, 128>}, {transform_indices = @transform_3, window_bounds = array<i64: 1, 1, 128>}, {transform_indices = @transform_4, window_bounds = array<i64: 1, 1, 128>}]} {
    %cst = arith.constant 0.000000e+00 : f32
    %0 = vector.broadcast %cst : f32 to vector<144x128xf32>
    %c0 = arith.constant 0 : index
    %c0_0 = arith.constant 0 : index
    %c0_1 = arith.constant 0 : index
    %1 = vector.load %arg1[%c0, %c0_0, %c0_1] : memref<1x182x4xbf16, #tpu.memory_space<vmem>>, vector<1x144x4xbf16>
    %2 = vector.shape_cast %1 : vector<1x144x4xbf16> to vector<144x4xbf16>
    %c0_2 = arith.constant 0 : index
    %c0_3 = arith.constant 0 : index
    %c0_4 = arith.constant 0 : index
    %3 = vector.load %arg2[%c0_2, %c0_3, %c0_4] : memref<9x4x128xbf16, #tpu.memory_space<vmem>>, vector<1x4x128xbf16>
    %4 = vector.shape_cast %3 : vector<1x4x128xbf16> to vector<4x128xbf16>
    %cst_5 = arith.constant dense<0.000000e+00> : vector<144x128xf32>
    %5 = tpu.matmul %2, %4, %cst_5 {dimension_numbers = #tpu.dot_dimension_numbers<[1], [0], [0], [1], [0, 0, 1, 1], [], []>} : vector<144x4xbf16>, vector<4x128xbf16>, vector<144x128xf32> -> vector<144x128xf32>
    %6 = arith.addf %0, %5 : vector<144x128xf32>
    %c0_6 = arith.constant 0 : index
    %c1 = arith.constant 1 : index
    %c0_7 = arith.constant 0 : index
    %7 = vector.load %arg1[%c0_6, %c1, %c0_7] : memref<1x182x4xbf16, #tpu.memory_space<vmem>>, vector<1x144x4xbf16>
    %8 = vector.shape_cast %7 : vector<1x144x4xbf16> to vector<144x4xbf16>
    %c1_8 = arith.constant 1 : index
    %c0_9 = arith.constant 0 : index
    %c0_10 = arith.constant 0 : index
    %9 = vector.load %arg2[%c1_8, %c0_9, %c0_10] : memref<9x4x128xbf16, #tpu.memory_space<vmem>>, vector<1x4x128xbf16>
    %10 = vector.shape_cast %9 : vector<1x4x128xbf16> to vector<4x128xbf16>
    %cst_11 = arith.constant dense<0.000000e+00> : vector<144x128xf32>
    %11 = tpu.matmul %8, %10, %cst_11 {dimension_numbers = #tpu.dot_dimension_numbers<[1], [0], [0], [1], [0, 0, 1, 1], [], []>} : vector<144x4xbf16>, vector<4x128xbf16>, vector<144x128xf32> -> vector<144x128xf32>
    %12 = arith.addf %6, %11 : vector<144x128xf32>
    %c0_12 = arith.constant 0 : index
    %c2 = arith.constant 2 : index
    %c0_13 = arith.constant 0 : index
    %13 = vector.load %arg1[%c0_12, %c2, %c0_13] : memref<1x182x4xbf16, #tpu.memory_space<vmem>>, vector<1x144x4xbf16>
    %14 = vector.shape_cast %13 : vector<1x144x4xbf16> to vector<144x4xbf16>
    %c2_14 = arith.constant 2 : index
    %c0_15 = arith.constant 0 : index
    %c0_16 = arith.constant 0 : index
    %15 = vector.load %arg2[%c2_14, %c0_15, %c0_16] : memref<9x4x128xbf16, #tpu.memory_space<vmem>>, vector<1x4x128xbf16>
    %16 = vector.shape_cast %15 : vector<1x4x128xbf16> to vector<4x128xbf16>
    %cst_17 = arith.constant dense<0.000000e+00> : vector<144x128xf32>
    %17 = tpu.matmul %14, %16, %cst_17 {dimension_numbers = #tpu.dot_dimension_numbers<[1], [0], [0], [1], [0, 0, 1, 1], [], []>} : vector<144x4xbf16>, vector<4x128xbf16>, vector<144x128xf32> -> vector<144x128xf32>
    %18 = arith.addf %12, %17 : vector<144x128xf32>
    %c0_18 = arith.constant 0 : index
    %c18 = arith.constant 18 : index
    %c0_19 = arith.constant 0 : index
    %19 = vector.load %arg1[%c0_18, %c18, %c0_19] : memref<1x182x4xbf16, #tpu.memory_space<vmem>>, vector<1x144x4xbf16>
    %20 = vector.shape_cast %19 : vector<1x144x4xbf16> to vector<144x4xbf16>
    %c3 = arith.constant 3 : index
    %c0_20 = arith.constant 0 : index
    %c0_21 = arith.constant 0 : index
    %21 = vector.load %arg2[%c3, %c0_20, %c0_21] : memref<9x4x128xbf16, #tpu.memory_space<vmem>>, vector<1x4x128xbf16>
    %22 = vector.shape_cast %21 : vector<1x4x128xbf16> to vector<4x128xbf16>
    %cst_22 = arith.constant dense<0.000000e+00> : vector<144x128xf32>
    %23 = tpu.matmul %20, %22, %cst_22 {dimension_numbers = #tpu.dot_dimension_numbers<[1], [0], [0], [1], [0, 0, 1, 1], [], []>} : vector<144x4xbf16>, vector<4x128xbf16>, vector<144x128xf32> -> vector<144x128xf32>
    %24 = arith.addf %18, %23 : vector<144x128xf32>
    %c0_23 = arith.constant 0 : index
    %c19 = arith.constant 19 : index
    %c0_24 = arith.constant 0 : index
    %25 = vector.load %arg1[%c0_23, %c19, %c0_24] : memref<1x182x4xbf16, #tpu.memory_space<vmem>>, vector<1x144x4xbf16>
    %26 = vector.shape_cast %25 : vector<1x144x4xbf16> to vector<144x4xbf16>
    %c4 = arith.constant 4 : index
    %c0_25 = arith.constant 0 : index
    %c0_26 = arith.constant 0 : index
    %27 = vector.load %arg2[%c4, %c0_25, %c0_26] : memref<9x4x128xbf16, #tpu.memory_space<vmem>>, vector<1x4x128xbf16>
    %28 = vector.shape_cast %27 : vector<1x4x128xbf16> to vector<4x128xbf16>
    %cst_27 = arith.constant dense<0.000000e+00> : vector<144x128xf32>
    %29 = tpu.matmul %26, %28, %cst_27 {dimension_numbers = #tpu.dot_dimension_numbers<[1], [0], [0], [1], [0, 0, 1, 1], [], []>} : vector<144x4xbf16>, vector<4x128xbf16>, vector<144x128xf32> -> vector<144x128xf32>
    %30 = arith.addf %24, %29 : vector<144x128xf32>
    %c0_28 = arith.constant 0 : index
    %c20 = arith.constant 20 : index
    %c0_29 = arith.constant 0 : index
    %31 = vector.load %arg1[%c0_28, %c20, %c0_29] : memref<1x182x4xbf16, #tpu.memory_space<vmem>>, vector<1x144x4xbf16>
    %32 = vector.shape_cast %31 : vector<1x144x4xbf16> to vector<144x4xbf16>
    %c5 = arith.constant 5 : index
    %c0_30 = arith.constant 0 : index
    %c0_31 = arith.constant 0 : index
    %33 = vector.load %arg2[%c5, %c0_30, %c0_31] : memref<9x4x128xbf16, #tpu.memory_space<vmem>>, vector<1x4x128xbf16>
    %34 = vector.shape_cast %33 : vector<1x4x128xbf16> to vector<4x128xbf16>
    %cst_32 = arith.constant dense<0.000000e+00> : vector<144x128xf32>
    %35 = tpu.matmul %32, %34, %cst_32 {dimension_numbers = #tpu.dot_dimension_numbers<[1], [0], [0], [1], [0, 0, 1, 1], [], []>} : vector<144x4xbf16>, vector<4x128xbf16>, vector<144x128xf32> -> vector<144x128xf32>
    %36 = arith.addf %30, %35 : vector<144x128xf32>
    %c0_33 = arith.constant 0 : index
    %c36 = arith.constant 36 : index
    %c0_34 = arith.constant 0 : index
    %37 = vector.load %arg1[%c0_33, %c36, %c0_34] : memref<1x182x4xbf16, #tpu.memory_space<vmem>>, vector<1x144x4xbf16>
    %38 = vector.shape_cast %37 : vector<1x144x4xbf16> to vector<144x4xbf16>
    %c6 = arith.constant 6 : index
    %c0_35 = arith.constant 0 : index
    %c0_36 = arith.constant 0 : index
    %39 = vector.load %arg2[%c6, %c0_35, %c0_36] : memref<9x4x128xbf16, #tpu.memory_space<vmem>>, vector<1x4x128xbf16>
    %40 = vector.shape_cast %39 : vector<1x4x128xbf16> to vector<4x128xbf16>
    %cst_37 = arith.constant dense<0.000000e+00> : vector<144x128xf32>
    %41 = tpu.matmul %38, %40, %cst_37 {dimension_numbers = #tpu.dot_dimension_numbers<[1], [0], [0], [1], [0, 0, 1, 1], [], []>} : vector<144x4xbf16>, vector<4x128xbf16>, vector<144x128xf32> -> vector<144x128xf32>
    %42 = arith.addf %36, %41 : vector<144x128xf32>
    %c0_38 = arith.constant 0 : index
    %c37 = arith.constant 37 : index
    %c0_39 = arith.constant 0 : index
    %43 = vector.load %arg1[%c0_38, %c37, %c0_39] : memref<1x182x4xbf16, #tpu.memory_space<vmem>>, vector<1x144x4xbf16>
    %44 = vector.shape_cast %43 : vector<1x144x4xbf16> to vector<144x4xbf16>
    %c7 = arith.constant 7 : index
    %c0_40 = arith.constant 0 : index
    %c0_41 = arith.constant 0 : index
    %45 = vector.load %arg2[%c7, %c0_40, %c0_41] : memref<9x4x128xbf16, #tpu.memory_space<vmem>>, vector<1x4x128xbf16>
    %46 = vector.shape_cast %45 : vector<1x4x128xbf16> to vector<4x128xbf16>
    %cst_42 = arith.constant dense<0.000000e+00> : vector<144x128xf32>
    %47 = tpu.matmul %44, %46, %cst_42 {dimension_numbers = #tpu.dot_dimension_numbers<[1], [0], [0], [1], [0, 0, 1, 1], [], []>} : vector<144x4xbf16>, vector<4x128xbf16>, vector<144x128xf32> -> vector<144x128xf32>
    %48 = arith.addf %42, %47 : vector<144x128xf32>
    %c0_43 = arith.constant 0 : index
    %c38 = arith.constant 38 : index
    %c0_44 = arith.constant 0 : index
    %49 = vector.load %arg1[%c0_43, %c38, %c0_44] : memref<1x182x4xbf16, #tpu.memory_space<vmem>>, vector<1x144x4xbf16>
    %50 = vector.shape_cast %49 : vector<1x144x4xbf16> to vector<144x4xbf16>
    %c8 = arith.constant 8 : index
    %c0_45 = arith.constant 0 : index
    %c0_46 = arith.constant 0 : index
    %51 = vector.load %arg2[%c8, %c0_45, %c0_46] : memref<9x4x128xbf16, #tpu.memory_space<vmem>>, vector<1x4x128xbf16>
    %52 = vector.shape_cast %51 : vector<1x4x128xbf16> to vector<4x128xbf16>
    %cst_47 = arith.constant dense<0.000000e+00> : vector<144x128xf32>
    %53 = tpu.matmul %50, %52, %cst_47 {dimension_numbers = #tpu.dot_dimension_numbers<[1], [0], [0], [1], [0, 0, 1, 1], [], []>} : vector<144x4xbf16>, vector<4x128xbf16>, vector<144x128xf32> -> vector<144x128xf32>
    %54 = arith.addf %48, %53 : vector<144x128xf32>
    %c0_48 = arith.constant 0 : index
    %c0_49 = arith.constant 0 : index
    %c0_50 = arith.constant 0 : index
    %55 = vector.load %arg3[%c0_48, %c0_49, %c0_50] : memref<1x144x128xf32, #tpu.memory_space<vmem>>, vector<1x144x128xf32>
    %56 = vector.shape_cast %55 : vector<1x144x128xf32> to vector<144x128xf32>
    %57 = vector.shape_cast %54 : vector<144x128xf32> to vector<1x144x128xf32>
    tpu.vector_store %arg3[%c0_48, %c0_49, %c0_50], %57 {strides = array<i32>} : memref<1x144x128xf32, #tpu.memory_space<vmem>>, vector<1x144x128xf32>,
    %58 = tpu.iota {dimensions = array<i32: 0>} : vector<144x1xi32>
    %c18_i32 = arith.constant 18 : i32
    %c0_i32 = arith.constant 0 : i32
    %59 = arith.cmpi eq, %c18_i32, %c0_i32 : i32
    %c1_i32 = arith.constant 1 : i32
    %60 = arith.select %59, %c1_i32, %c18_i32 : i32
    %61 = vector.broadcast %60 : i32 to vector<144x1xi32>
    %62 = arith.remsi %58, %61 : vector<144x1xi32>
    %c0_i32_51 = arith.constant 0 : i32
    %63 = vector.broadcast %c0_i32_51 : i32 to vector<144x1xi32>
    %64 = arith.cmpi ne, %62, %63 : vector<144x1xi32>
    %c0_i32_52 = arith.constant 0 : i32
    %65 = vector.broadcast %c0_i32_52 : i32 to vector<144x1xi32>
    %66 = arith.cmpi slt, %62, %65 : vector<144x1xi32>
    %c0_i32_53 = arith.constant 0 : i32
    %67 = arith.cmpi slt, %60, %c0_i32_53 : i32
    %68 = vector.broadcast %67 : i1 to vector<144x1xi1>
    %69 = vector.broadcast %68 : vector<144x1xi1> to vector<144x1xi1>
    %70 = arith.xori %66, %69 : vector<144x1xi1>
    %71 = arith.andi %70, %64 : vector<144x1xi1>
    %72 = vector.broadcast %60 : i32 to vector<144x1xi32>
    %73 = arith.addi %62, %72 : vector<144x1xi32>
    %74 = arith.select %71, %73, %62 : vector<144x1xi1>, vector<144x1xi32>
    %c16_i32 = arith.constant 16 : i32
    %75 = vector.broadcast %c16_i32 : i32 to vector<144x1xi32>
    %76 = arith.cmpi slt, %74, %75 : vector<144x1xi32>
    %77 = arith.extui %76 : vector<144x1xi1> to vector<144x1xi32>
    %78 = arith.sitofp %77 : vector<144x1xi32> to vector<144x1xf32>
    %79 = vector.broadcast %78 : vector<144x1xf32> to vector<144x128xf32>
    %80 = arith.mulf %54, %79 : vector<144x128xf32>
    %cst_54 = arith.constant dense<0.000000e+00> : vector<128xf32>
    %81 = vector.multi_reduction <add>, %80, %cst_54 [0] : vector<144x128xf32> to vector<128xf32>
    %82 = vector.shape_cast %81 : vector<128xf32> to vector<1x128xf32>
    %c0_55 = arith.constant 0 : index
    %c0_56 = arith.constant 0 : index
    %c0_57 = arith.constant 0 : index
    %83 = vector.load %arg4[%c0_55, %c0_56, %c0_57] : memref<1x1x128xf32, #tpu.memory_space<vmem>>, vector<1x1x128xf32>
    %84 = vector.shape_cast %83 : vector<1x1x128xf32> to vector<1x128xf32>
    %85 = vector.shape_cast %82 : vector<1x128xf32> to vector<1x1x128xf32>
    tpu.vector_store %arg4[%c0_55, %c0_56, %c0_57], %85 {strides = array<i32>} : memref<1x1x128xf32, #tpu.memory_space<vmem>>, vector<1x1x128xf32>,
    %86 = arith.mulf %54, %54 : vector<144x128xf32>
    %87 = vector.broadcast %78 : vector<144x1xf32> to vector<144x128xf32>
    %88 = arith.mulf %86, %87 : vector<144x128xf32>
    %cst_58 = arith.constant dense<0.000000e+00> : vector<128xf32>
    %89 = vector.multi_reduction <add>, %88, %cst_58 [0] : vector<144x128xf32> to vector<128xf32>
    %90 = vector.shape_cast %89 : vector<128xf32> to vector<1x128xf32>
    %c0_59 = arith.constant 0 : index
    %c0_60 = arith.constant 0 : index
    %c0_61 = arith.constant 0 : index
    %91 = vector.load %arg5[%c0_59, %c0_60, %c0_61] : memref<1x1x128xf32, #tpu.memory_space<vmem>>, vector<1x1x128xf32>
    %92 = vector.shape_cast %91 : vector<1x1x128xf32> to vector<1x128xf32>
    %93 = vector.shape_cast %90 : vector<1x128xf32> to vector<1x1x128xf32>
    tpu.vector_store %arg5[%c0_59, %c0_60, %c0_61], %93 {strides = array<i32>} : memref<1x1x128xf32, #tpu.memory_space<vmem>>, vector<1x1x128xf32>,
    return
  }
  func.func @transform_0(%arg0: i32) -> (i32, i32, i32) {
    %c0_i32 = arith.constant 0 : i32
    %c0_i32_0 = arith.constant 0 : i32
    %c0_i32_1 = arith.constant 0 : i32
    return %arg0, %c0_i32, %c0_i32_0 : i32, i32, i32
  }
  func.func @transform_1(%arg0: i32) -> (i32, i32, i32) {
    %c0_i32 = arith.constant 0 : i32
    %c0_i32_0 = arith.constant 0 : i32
    %c0_i32_1 = arith.constant 0 : i32
    %c0_i32_2 = arith.constant 0 : i32
    return %c0_i32, %c0_i32_0, %c0_i32_1 : i32, i32, i32
  }
  func.func @transform_2(%arg0: i32) -> (i32, i32, i32) {
    %c0_i32 = arith.constant 0 : i32
    %c0_i32_0 = arith.constant 0 : i32
    %c0_i32_1 = arith.constant 0 : i32
    return %arg0, %c0_i32, %c0_i32_0 : i32, i32, i32
  }
  func.func @transform_3(%arg0: i32) -> (i32, i32, i32) {
    %c0_i32 = arith.constant 0 : i32
    %c0_i32_0 = arith.constant 0 : i32
    %c0_i32_1 = arith.constant 0 : i32
    return %arg0, %c0_i32, %c0_i32_0 : i32, i32, i32
  }
  func.func @transform_4(%arg0: i32) -> (i32, i32, i32) {
    %c0_i32 = arith.constant 0 : i32
    %c0_i32_0 = arith.constant 0 : i32
    %c0_i32_1 = arith.constant 0 : i32
    return %arg0, %c0_i32, %c0_i32_0 : i32, i32, i32
  }
}

</mosaic_0001>

<bundles_post_ra>
// kernel: tpu_custom_call.1
= control target key start
LH: loop header
LB: loop body
LE: loop exit
PB: predicated region body
PF: predicated region fallthrough
CT: control target
= control target key end

     0   :  { %10 = vsyncpa [#allocation3], 0  ;;  %s5181_s0 = inlined_call_operand.vmem [shape: bf16[4,182,4], index: 0, kind: input, shape index: {}]   ;;  %s5182_s1 = inlined_call_operand.vmem [shape: bf16[9,4,128], index: 1, kind: input, shape index: {}]   ;;  %s5183_s2 = inlined_call_operand.hbm [shape: f32[4,144,128], index: 2, kind: output, shape index: {0}]   ;;  %s5184_s3 = inlined_call_operand.hbm [shape: f32[4,1,128], index: 3, kind: output, shape index: {1}]   ;;  %s5185_s4 = inlined_call_operand.hbm [shape: f32[4,1,128], index: 4, kind: output, shape index: {2}]  }
   0x1   :  { %12 = vsyncpa [#allocation3 + $0x1], 0 }
   0x2   :  { %13 = vsyncpa [#allocation5], 0 }
   0x3   :  { %15 = vsyncpa [#allocation5 + $0x1], 0  ;;  %s3923_s15 = smov 0   ;;  %s3925_s16 = smov 0  }
   0x4   :  { %s3927_s17 = smov 0   ;;  %s3929_s18 = smov 0  }
   0x5 LB: > { %s3944_s19 = sadd.s32 4294967295, %s3889_s18   ;;  %s2784_s20 = sadd.s32 4294967294, %s3889_s18   ;;  %s3889_s18 = sphi %s3929_s18, %s5249_s18   ;;  %s3885_s17 = sphi %s3927_s17, %s5248_s17   ;;  %s3881_s16 = sphi %s3925_s16, %s5247_s16   ;;  %s3877_s15 = sphi %s3923_s15, %s5246_s15  }
   0x6   : > { %s3948_s21 = sadd.s32 1, %s3889_s18   ;;  %s75_s22 = sadd.s32 1, %s3885_s17 }
   0x7   : > { %s72_s23 = ssub.s32 %s3889_s18, %s3948_s21  ;;  %p85_p0 = scmp.ne.s32.totalorder %s3885_s17, %s3881_s16 }
   0x8   : > { %p73_p1 = scmp.eq.s32.totalorder %s72_s23, 0  ;;  %p86_p2 = scmp.eq.s32.totalorder %s3944_s19, 3 }
   0x9   : > { %p91_p3 = scmp.ne.s32.totalorder %s3881_s16, %s3877_s15  ;;  %p92_p4 = scmp.eq.s32.totalorder %s2784_s20, 3 }
   0xa   : > { %s3961_s24 = scalar_select %p73_p1, %s3885_s17, %s75_s22  }
   0xb   : > { %p3963_p5 = por %p86_p2, %p85_p0  ;;  %p3967_p6 = por %p92_p4, %p91_p3 }
   0xc   : > { %p2787_p7 = scmp.ge.s32.totalorder %s3889_s18, 1  ;;  %p173_p8 = scmp.lt.s32.totalorder %s3889_s18, 5 }
   0xe   : > { %p174_p9 = pnand %p2787_p7, %p173_p8 }
   0xf   : > { %vm388_vm0 = vcmask (!%p174_p9), 1041408   ;;  %v2849_v0 = vld [vmem:[%s5182_s1 + $0x8] sm:$0x3] (!%p174_p9)  ;;  %v2789_v1 = vld [vmem:[%s5182_s1 + $0x2] sm:$0x3] (!%p174_p9)  ;;  %v3891_v2 = vmov (!%p174_p9), 0.0  }
  0x10   : > { %177 = sbr.rel (%p174_p9) target bundleno = 640 (0x280), region = 28  ;;  %3178 = vmatprep.subr.bf16.mxu0 (!%p174_p9), %v3891_v2  ;;  %3026 = vmatprep.subr.bf16.mxu1 (!%p174_p9), %v3891_v2  ;;  %v3982_v3 = vsel (!%p174_p9), %vm388_vm0, %v2849_v0, 0  ;;  %v390_v4 = vsel (!%p174_p9), %vm388_vm0, %v2789_v1, 0  ;;  %p207_p10 = scmp.lt.s32.totalorder (!%p174_p9), %s3944_s19, 3  ;;  %vm3892_vm1 = vmmov (!%p174_p9), 0   ;;  %vm360_vm4 = vcmask (!%p174_p9), 31744  }
  0x11   : > { %3179 = vmatpush3.bf16.msra.mxu0 (!%p174_p9), %v3982_v3  ;;  %3027 = vmatpush3.bf16.msra.mxu1 (!%p174_p9), %v390_v4  ;;  %vm283_vm2 = vsmask.f32 (!%p174_p9), 7424  ;;  %vm1049_vm3 = vsmask.f32 (!%p174_p9), 6400  ;;  %v231_v16 = vld [vmem:[%s5182_s1] sm:$0x3] (!%p174_p9) }
  0x12   : > { %3028 = vmatprep.mubr.msk.bf16.mxu1 (!%p174_p9), %vm3892_vm1, %v3891_v2  ;;  %3180 = vmatprep.mubr.msk.bf16.mxu0 (!%p174_p9), %vm3892_vm1, %v3891_v2  ;;  %v2860_v24 = vld [vmem:[%s5182_s1 + $0xa] sm:$0x3] (!%p174_p9)  ;;  %v516_v33 = vsel (!%p174_p9), %vm388_vm0, %v231_v16, 0  ;;  %vm1298_vm5 = vcmask (!%p174_p9), 1045504   ;;  %vm629_vm6 = vcmask (!%p174_p9), 1046528   ;;  %vm1967_vm8 = vcmask (!%p174_p9), 1044480  }
  0x13   : > { %3216 = vmatprep.subr.bf16.mxu0 (!%p174_p9), %v3891_v2  ;;  %3064 = vmatprep.subr.bf16.mxu1 (!%p174_p9), %v3891_v2  ;;  %v1346_v41 = vsel (!%p174_p9), %vm388_vm0, %v2860_v24, 0  ;;  %vm1718_vm7 = vsmask.f32 (!%p174_p9), 5376  ;;  %s4666_s8 = sand.u32 (!%p174_p9), 1, %s3881_s16   ;;  %s3678_s11 = smul.u32 (!%p174_p9), 2304, %s3944_s19 }
  0x14   : > { %s2622_s23 = scalar_lea.sflag (!%p174_p9), [#allocation3], %s4666_s8  ;;  %s3893_s28 = smov (!%p174_p9), [#allocation2]  }
  0x15   : > { %s5064_s22 = scalar_lea.hbm (!%p174_p9), %s5183_s2, %s3678_s11  ;;  %s3771_s29 = sshll.u32 (!%p174_p9), %s3893_s28, 4  ;;  %s3772_s29 = int_to_ptr.vmem [resolvable:$false] %s3771_s29 }
  0x16   : > { %s3773_s30 = scalar_lea.vmem (!%p174_p9), %s3772_s29, 4608 }
  0x17   : > { %s208_s5 = scalar_select %p207_p10, %s3944_s19, 3 }
  0x19   : > { %s3641_s6 = smul.u32 92, %s208_s5 }
  0x1b   : > { %s3997_s9 = scalar_lea.vmem %s5181_s0, %s3641_s6 }
  0x1c   : > { %v213_v5 = vld [vmem:[%s3997_s9] sm:$0xf]  ;;  %v4001_v6 = vld [vmem:[%s3997_s9 + $0x4] sm:$0xf]  ;;  %v4007_v8 = vld [vmem:[%s3997_s9 + $0x8] sm:$0xff]  }
  0x1d   : > { %v4004_v7 = vcombine.low %v213_v5, %v4001_v6  ;;  %v802_v9 = vld [vmem:[%s3997_s9 + $0x8] sm:$0xe]  ;;  %v4011_v10 = vld [vmem:[%s3997_s9 + $0xc] sm:$0xf]  ;;  %v292_v13 = vshll.u32 %v4007_v8, 16  ;;  %v4020_v15 = vld [vmem:[%s3997_s9 + $0x10] sm:$0xff]  }
  0x1e   : > { %v4017_v14 = vcombine.low %v802_v9, %v4011_v10  ;;  %v4026_v17 = vld [vmem:[%s3997_s9 + $0x10] sm:$0xff]   ;;  %v1059_v22 = vshrl.u32 %v4020_v15, 16  ;;  %v1062_v23 = vshll.u32 %v4020_v15, 16  ;;  %v296_v25 = vshrl.u32 %v4007_v8, 16  ;;  %v4037_v26 = vld [vmem:[%s3997_s9 + $0x18] sm:$0xff]   ;;  %v4046_v40 = vld [vmem:[%s3997_s9 + $0x20] sm:$0xff]  }
  0x1f   : > { %v285_v11 = vshrl.u32 %v4004_v7, 16  ;;  %v287_v12 = vshll.u32 %v4004_v7, 16  ;;  %v294_v19 = vrot.slane %v292_v13, 1  ;;  %v300_v30 = vshll.u32 %v4026_v17, 16  ;;  %v4052_v45 = vld [vmem:[%s3997_s9 + $0x18] sm:$0xff]   ;;  %v4068_v56 = vld [vmem:[%s3997_s9 + $0x28] sm:$0xff]  }
  0x20   : > { %v1051_v20 = vshrl.u32 %v4017_v14, 16  ;;  %v1054_v21 = vshll.u32 %v4017_v14, 16  ;;  %v1061_v31 = vrot.slane %v1059_v22, 1  ;;  %v1064_v32 = vrot.slane %v1062_v23, 2  ;;  %v4073_v59 = vld [vmem:[%s3997_s9 + $0x20] sm:$0xff]   ;;  %v4091_v16 = vld [vmem:[%s3997_s9 + $0x28] sm:$0xff]  }
  0x21   : > { %v289_v18 = vrot.slane %v287_v12, 1  ;;  %v1068_v34 = vshrl.u32 %v4037_v26, 16  ;;  %v1071_v37 = vshll.u32 %v4037_v26, 16  ;;  %v298_v42 = vor.u32 %v296_v25, %v294_v19 }
  0x22   : > { %v1053_v28 = vrot.slane %v1051_v20, 1  ;;  %v1056_v29 = vrot.slane %v1054_v21, 2  ;;  %v1065_v38 = vor.u32 %v1064_v32, %v1061_v31  ;;  %v302_v43 = vrot.slane %v300_v30, 1  ;;  %v4106_v30 = vld [vmem:[%s3997_s9 + $0x30] sm:$0xff]  }
  0x23   : > { %v290_v27 = vor.u32 %v289_v18, %v285_v11  ;;  %v1070_v39 = vrot.slane %v1068_v34, 1  ;;  %v1073_v44 = vrot.slane %v1071_v37, 2  ;;  %v1077_v48 = vshrl.u32 %v4046_v40, 16  ;;  %v4086_v11 = vld [vmem:[%s3997_s9 + $0x30] sm:$0xff]  }
  0x24   : > { %v1057_v36 = vor.u32 %v1056_v29, %v1053_v28  ;;  %v1080_v49 = vshll.u32 %v4046_v40, 16  ;;  %v303_v50 = vsel %vm283_vm2, %v298_v42, %v302_v43  ;;  %v304_v51 = vshrl.u32 %v4026_v17, 16 }
  0x25   : > { %v295_v35 = vsel %vm283_vm2, %v290_v27, %v294_v19  ;;  %v1074_v47 = vor.u32 %v1073_v44, %v1070_v39  ;;  %v308_v52 = vshll.u32 %v4052_v45, 16  ;;  %v1079_v54 = vrot.slane %v1077_v48, 1 }
  0x26   : > { %3029 = vmatmul.mubr.msk.bf16.vlgmr.msra.gmra.mrb[0].mxu1 %vm360_vm4, %v295_v35  ;;  %v1066_v46 = vsel %vm1049_vm3, %v1057_v36, %v1065_v38  ;;  %v1082_v55 = vrot.slane %v1080_v49, 2  ;;  %v306_v57 = vor.u32 %v304_v51, %v302_v43  ;;  %v1086_v61 = vshrl.u32 %v4068_v56, 16  ;;  %v1292_v35 = vld [vmem:[%s3997_s9 + $0x8] sm:$0xc] }
  0x27   : > { %3032 = vmatprep.mubr.msk.bf16.mxu1 %vm3892_vm1, %v3891_v2  ;;  %3065 = vmatpush3.bf16.msra.mxu1 %v516_v33  ;;  %v1075_v53 = vsel %vm1049_vm3, %v1065_v38, %v1074_v47  ;;  %v310_v58 = vrot.slane %v308_v52, 1  ;;  %v1089_v62 = vshll.u32 %v4068_v56, 16  ;;  %v312_v0 = vshrl.u32 %v4052_v45, 16  ;;  %v4142_v52 = vld [vmem:[%s3997_s9 + $0x40] sm:$0xff]  }
  0x28   : > { %3102 = vmatprep.subr.bf16.mxu1 %v3891_v2  ;;  %3181 = vmatmul.mubr.msk.bf16.vlgmr.msra.gmra.mrb[0].mxu0 %vm360_vm4, %v1066_v46  ;;  %v1083_v60 = vor.u32 %v1082_v55, %v1079_v54  ;;  %v316_v1 = vshll.u32 %v4073_v59, 16  ;;  %v1088_v5 = vrot.slane %v1086_v61, 1  ;;  %v1095_v19 = vshrl.u32 %v4086_v11, 16 }
  0x29   : > { %3217 = vmatpush3.bf16.msra.mxu0 %v1346_v41  ;;  %3184 = vmatprep.mubr.msk.bf16.mxu0 %vm3892_vm1, %v3891_v2  ;;  %v311_v63 = vsel %vm283_vm2, %v306_v57, %v310_v58  ;;  %v1091_v9 = vrot.slane %v1089_v62, 2  ;;  %v314_v12 = vor.u32 %v312_v0, %v310_v58  ;;  %v1098_v20 = vshll.u32 %v4086_v11, 16  ;;  %v4124_v41 = vld [vmem:[%s3997_s9 + $0x38] sm:$0xff]   ;;  %v4157_v62 = vld [vmem:[%s3997_s9 + $0x48] ss:$0 sps:$4 sm:$0x11]  }
  0x2a   : > { %3254 = vmatprep.subr.bf16.mxu0 %v3891_v2  ;;  %v1084_v4 = vsel %vm1049_vm3, %v1074_v47, %v1083_v60  ;;  %v318_v13 = vrot.slane %v316_v1, 1  ;;  %v320_v22 = vshrl.u32 %v4073_v59, 16  ;;  %v324_v23 = vshll.u32 %v4091_v16, 16  ;;  %v2871_v47 = vld [vmem:[%s5182_s1 + $0xc] sm:$0x3] }
  0x2b   : > { %v1092_v18 = vor.u32 %v1091_v9, %v1088_v5  ;;  %v1097_v25 = vrot.slane %v1095_v19, 1  ;;  %v1100_v27 = vrot.slane %v1098_v20, 2  ;;  %v328_v33 = vshrl.u32 %v4091_v16, 16  ;;  %v2818_v20 = vld [vmem:[%s5182_s1 + $0x4] sm:$0x3] }
  0x2c   : > { %v319_v21 = vsel %vm283_vm2, %v314_v12, %v318_v13  ;;  %v322_v28 = vor.u32 %v320_v22, %v318_v13  ;;  %v326_v29 = vrot.slane %v324_v23, 1  ;;  %v332_v34 = vshll.u32 %v4106_v30, 16 }
  0x2d   : > { %v1093_v24 = vsel %vm1049_vm3, %v1083_v60, %v1092_v18  ;;  %v4111_v31 = vor.u32 %v1100_v27, %v1097_v25  ;;  %v2861_v37 = vcombine.low %v1292_v35, %v4011_v10  ;;  %v1300_v43 = vrot.slane %v4020_v15, 2  ;;  %v4204_v27 = vld [vmem:[%s3997_s9 + $0x40] sm:$0xff]   ;;  %v4228_v35 = vld [vmem:[%s3997_s9 + $0x50] ss:$0 sps:$4 sm:$0x33]  }
  0x2e   : > { %3033 = vmatmul.mubr.msk.bf16.gmra.mrb[4].mxu1 %vm360_vm4, %v303_v50  ;;  %v327_v32 = vsel %vm283_vm2, %v322_v28, %v326_v29  ;;  %v330_v38 = vor.u32 %v328_v33, %v326_v29  ;;  %v334_v39 = vrot.slane %v332_v34, 1  ;;  %v336_v10 = vshrl.u32 %v4106_v30, 16 }
  0x2f   : > { %3036 = vmatprep.mubr.msk.bf16.mxu1 %vm3892_vm1, %v3891_v2  ;;  %v1102_v36 = vsel %vm1049_vm3, %v1092_v18, %v4111_v31  ;;  %v1299_v42 = vrot.slane %v2861_v37, 2  ;;  %v340_v46 = vshll.u32 %v4124_v41, 16  ;;  %v1587_v49 = vsel %vm388_vm0, %v2871_v47, 0  ;;  %v1471_v37 = vld [vmem:[%s3997_s9 + $0x10] sm:$0xc] }
  0x30   : > { %3185 = vmatmul.mubr.msk.bf16.gmra.mrb[4].mxu0 %vm360_vm4, %v1075_v53  ;;  %v335_v44 = vsel %vm283_vm2, %v330_v38, %v334_v39  ;;  %v338_v50 = vor.u32 %v336_v10, %v334_v39  ;;  %v1302_v53 = vrot.slane %v4037_v26, 2  ;;  %v344_v55 = vshrl.u32 %v4124_v41, 16  ;;  %v4238_v38 = vld [vmem:[%s3997_s9 + $0x14] sm:$0xf] }
  0x31   : > { %3188 = vmatprep.mubr.msk.bf16.mxu0 %vm3892_vm1, %v3891_v2  ;;  %v1301_v48 = vsel %vm1298_vm5, %v1299_v42, %v1300_v43  ;;  %v342_v51 = vrot.slane %v340_v46, 1  ;;  %v348_v57 = vshll.u32 %v4142_v52, 16  ;;  %v352_v1 = vshrl.u32 %v4142_v52, 16  ;;  %v2891_v46 = vld [vmem:[%s5182_s1 + $0xe] sm:$0x3] }
  0x32   : > { %v1303_v58 = vsel %vm1298_vm5, %v1300_v43, %v1302_v53  ;;  %v1306_v13 = vrot.slane %v4068_v56, 2  ;;  %v677_v22 = vsel %vm388_vm0, %v2818_v20, 0  ;;  %v1312_v28 = vrot.slane %v4204_v27, 2  ;;  %v4247_v43 = vld [vmem:[%s3997_s9 + $0x18] sm:$0xff]  }
  0x33   : > { %v343_v54 = vsel %vm283_vm2, %v338_v50, %v342_v51  ;;  %v346_v60 = vor.u32 %v344_v55, %v342_v51  ;;  %v350_v61 = vrot.slane %v348_v57, 1  ;;  %v4244_v42 = vcombine.low %v1471_v37, %v4238_v38  ;;  %v4289_v57 = vld [vmem:[%s3997_s9 + $0x30] sm:$0xff]  }
  0x34   : > { %v1541_v10 = vrot.slane %v4247_v43, 2  ;;  %v639_v37 = vrot.slane %v4091_v16, 1 }
  0x35   : > { %v351_v0 = vsel %vm283_vm2, %v346_v60, %v350_v61  ;;  %v354_v9 = vor.u32 %v352_v1, %v350_v61  ;;  %v1547_v60 = vrot.slane %v4289_v57, 2 }
  0x36   : > { %3037 = vmatmul.mubr.msk.bf16.gmra.mrb[8].mxu1 %vm360_vm4, %v311_v63  ;;  %v1304_v63 = vrot.slane %v4046_v40, 2 }
  0x37   : > { %3040 = vmatprep.mubr.msk.bf16.mxu1 %vm3892_vm1, %v3891_v2 }
  0x38   : > { %3189 = vmatmul.mubr.msk.bf16.gmra.mrb[8].mxu0 %vm360_vm4, %v1084_v4  ;;  %v356_v4 = vshll.u32 %v4157_v62, 16  ;;  %v1305_v5 = vsel %vm1298_vm5, %v1302_v53, %v1304_v63  ;;  %v1307_v19 = vsel %vm1298_vm5, %v1304_v63, %v1306_v13  ;;  %v4277_v53 = vld [vmem:[%s3997_s9 + $0x28] sm:$0xff]  }
  0x39   : > { %3192 = vmatprep.mubr.msk.bf16.mxu0 %vm3892_vm1, %v3891_v2 }
  0x3a   : > { %v358_v12 = vrot.slane %v356_v4, 1  ;;  %v631_v4 = vrot.slane %v4007_v8, 1 }
  0x3c   : > { %v359_v18 = vsel %vm283_vm2, %v354_v9, %v358_v12 }
  0x3e   : > { %3041 = vmatmul.mubr.msk.bf16.gmra.mrb[12].mxu1 %vm360_vm4, %v319_v21  ;;  %v1308_v21 = vrot.slane %v4086_v11, 2 }
  0x3f   : > { %3044 = vmatprep.mubr.msk.bf16.mxu1 %vm3892_vm1, %v3891_v2 }
  0x40   : > { %3193 = vmatmul.mubr.msk.bf16.gmra.mrb[12].mxu0 %vm360_vm4, %v1093_v24  ;;  %v1309_v23 = vsel %vm1298_vm5, %v1306_v13, %v1308_v21  ;;  %v4191_v24 = vld [vmem:[%s3997_s9 + $0x38] sm:$0xff]   ;;  %v4320_v13 = vld [vmem:[%s3997_s9 + $0x40] sm:$0xff]  }
  0x41   : > { %3196 = vmatprep.mubr.msk.bf16.mxu0 %vm3892_vm1, %v3891_v2  ;;  %v1310_v25 = vrot.slane %v4191_v24, 2 }
  0x43   : > { %v1313_v29 = vsel %vm1298_vm5, %v1310_v25, %v1312_v28 }
  0x46   : > { %3045 = vmatmul.mubr.msk.bf16.gmra.mrb[16].mxu1 %vm360_vm4, %v327_v32  ;;  %v4216_v32 = vld [vmem:[%s3997_s9 + $0x48] sm:$0xff]  }
  0x47   : > { %3048 = vmatprep.mubr.msk.bf16.mxu1 %vm3892_vm1, %v3891_v2  ;;  %v1314_v33 = vrot.slane %v4216_v32, 2 }
  0x48   : > { %3197 = vmatmul.mubr.msk.bf16.gmra.mrb[16].mxu0 %vm360_vm4, %v1102_v36  ;;  %v1316_v36 = vrot.slane %v4228_v35, 2 }
  0x49   : > { %3218 = vmatprep.mubr.msk.bf16.mxu0 %vm3892_vm1, %v3891_v2  ;;  %v1315_v34 = vsel %vm1298_vm5, %v1312_v28, %v1314_v33  ;;  %v4347_v28 = vld [vmem:[%s3997_s9 + $0x50] sm:$0xff]  }
  0x4a   : > { %v1317_v39 = vsel %vm1298_vm5, %v1314_v33, %v1316_v36 }
  0x4e   : > { %3049 = vmatmul.mubr.msk.bf16.gmra.mrb[20].mxu1 %vm360_vm4, %v335_v44  ;;  %v1540_v44 = vrot.slane %v4244_v42, 2 }
  0x4f   : > { %3052 = vmatprep.mubr.msk.bf16.mxu1 %vm3892_vm1, %v3891_v2 }
  0x50   : > { %3219 = vmatmul.mubr.msk.bf16.vlgmr.msra.gmra.mrb[0].mxu0 %vm360_vm4, %v1301_v48  ;;  %v1542_v47 = vsel %vm1298_vm5, %v1540_v44, %v1541_v10  ;;  %v4263_v48 = vld [vmem:[%s3997_s9 + $0x20] sm:$0xff]   ;;  %v1723_v44 = vshll.u32 %v4244_v42, 16 }
  0x51   : > { %3255 = vmatpush3.bf16.msra.mxu0 %v1587_v49  ;;  %3222 = vmatprep.mubr.msk.bf16.mxu0 %vm3892_vm1, %v3891_v2  ;;  %v1836_v49 = vsel %vm388_vm0, %v2891_v46, 0  ;;  %v1543_v50 = vrot.slane %v4263_v48, 2  ;;  %v1731_v46 = vshll.u32 %v4247_v43, 16 }
  0x52   : > { %3292 = vmatprep.subr.bf16.mxu0 %v3891_v2 }
  0x53   : > { %v1544_v51 = vsel %vm1298_vm5, %v1541_v10, %v1543_v50  ;;  %v1728_v10 = vshrl.u32 %v4247_v43, 16 }
  0x56   : > { %3053 = vmatmul.mubr.msk.bf16.gmra.mrb[24].mxu1 %vm360_vm4, %v343_v54  ;;  %v1545_v54 = vrot.slane %v4277_v53, 2 }
  0x57   : > { %3056 = vmatprep.mubr.msk.bf16.mxu1 %vm3892_vm1, %v3891_v2 }
  0x58   : > { %3223 = vmatmul.mubr.msk.bf16.gmra.mrb[4].mxu0 %vm360_vm4, %v1303_v58  ;;  %v1546_v55 = vsel %vm1298_vm5, %v1543_v50, %v1545_v54  ;;  %v623_v58 = vld [vmem:[%s3997_s9] sm:$0xe]  ;;  %v1548_v63 = vsel %vm1298_vm5, %v1545_v54, %v1547_v60  ;;  %v1725_v50 = vrot.slane %v1723_v44, 3  ;;  %v1733_v54 = vrot.slane %v1731_v46, 3 }
  0x59   : > { %3226 = vmatprep.mubr.msk.bf16.mxu0 %vm3892_vm1, %v3891_v2  ;;  %v2819_v61 = vcombine.low %v623_v58, %v4001_v6  ;;  %v2829_v6 = vld [vmem:[%s5182_s1 + $0x6] sm:$0x3] }
  0x5a   : > { %v918_v12 = vsel %vm388_vm0, %v2829_v6, 0 }
  0x5b   : > { %v630_v1 = vrot.slane %v2819_v61, 1  ;;  %v1740_v61 = vshll.u32 %v4263_v48, 16 }
  0x5d   : > { %v632_v9 = vsel %vm629_vm6, %v630_v1, %v631_v4  ;;  %v2902_v1 = vld [vmem:[%s5182_s1 + $0x10] sm:$0x3]  ;;  %v1742_v6 = vrot.slane %v1740_v61, 3 }
  0x5e   : > { %3057 = vmatmul.mubr.msk.bf16.gmra.mrb[28].mxu1 %vm360_vm4, %v351_v0  ;;  %v4303_v0 = vld [vmem:[%s3997_s9 + $0x38] sm:$0xff]  }
  0x5f   : > { %3060 = vmatprep.mubr.msk.bf16.mxu1 %vm3892_vm1, %v3891_v2 }
  0x60   : > { %3227 = vmatmul.mubr.msk.bf16.gmra.mrb[8].mxu0 %vm360_vm4, %v1305_v5  ;;  %v1549_v5 = vrot.slane %v4303_v0, 2 }
  0x61   : > { %3230 = vmatprep.mubr.msk.bf16.mxu0 %vm3892_vm1, %v3891_v2 }
  0x66   : > { %3061 = vmatmul.mubr.msk.bf16.gmra.mrb[32].mxu1 %vm360_vm4, %v359_v18  ;;  %v633_v18 = vrot.slane %v4026_v17, 1 }
  0x67   : > { %3066 = vmatprep.mubr.msk.bf16.mxu1 %vm3892_vm1, %v3891_v2 }
  0x68   : > { %3231 = vmatmul.mubr.msk.bf16.gmra.mrb[12].mxu0 %vm360_vm4, %v1307_v19  ;;  %v1551_v19 = vrot.slane %v4320_v13, 2  ;;  %v634_v20 = vsel %vm629_vm6, %v631_v4, %v633_v18 }
  0x69   : > { %3234 = vmatprep.mubr.msk.bf16.mxu0 %vm3892_vm1, %v3891_v2 }
  0x6e   : > { %3067 = vmatmul.mubr.msk.bf16.vlgmr.msra.gmra.mrb[0].mxu1 %vm360_vm4, %v4004_v7  ;;  %v1311_v7 = vsel %vm1298_vm5, %v1308_v21, %v1310_v25  ;;  %v1552_v21 = vsel %vm1298_vm5, %v1549_v5, %v1551_v19 }
  0x6f   : > { %3070 = vmatprep.mubr.msk.bf16.mxu1 %vm3892_vm1, %v3891_v2  ;;  %3103 = vmatpush3.bf16.msra.mxu1 %v677_v22  ;;  %v4334_v22 = vld [vmem:[%s3997_s9 + $0x48] sm:$0xff]  }
  0x70   : > { %3140 = vmatprep.subr.bf16.mxu1 %v3891_v2  ;;  %3235 = vmatmul.mubr.msk.bf16.gmra.mrb[16].mxu0 %vm360_vm4, %v1309_v23  ;;  %v1553_v23 = vrot.slane %v4334_v22, 2 }
  0x71   : > { %3238 = vmatprep.mubr.msk.bf16.mxu0 %vm3892_vm1, %v3891_v2 }
  0x76   : > { %3071 = vmatmul.mubr.msk.bf16.gmra.mrb[4].mxu1 %vm360_vm4, %v4007_v8  ;;  %v1550_v8 = vsel %vm1298_vm5, %v1547_v60, %v1549_v5  ;;  %v1737_v60 = vshrl.u32 %v4263_v48, 16  ;;  %v2015_v5 = vsel %vm388_vm0, %v2902_v1, 0 }
  0x77   : > { %3074 = vmatprep.mubr.msk.bf16.mxu1 %vm3892_vm1, %v3891_v2 }
  0x78   : > { %3239 = vmatmul.mubr.msk.bf16.gmra.mrb[20].mxu0 %vm360_vm4, %v1311_v7  ;;  %v1554_v7 = vsel %vm1298_vm5, %v1551_v19, %v1553_v23  ;;  %v1739_v4 = vrot.slane %v1737_v60, 2  ;;  %v1785_v60 = vshll.u32 %v4334_v22, 16 }
  0x79   : > { %3242 = vmatprep.mubr.msk.bf16.mxu0 %vm3892_vm1, %v3891_v2 }
  0x7a   : > { %v1787_v1 = vrot.slane %v1785_v60, 3 }
  0x7e   : > { %3075 = vmatmul.mubr.msk.bf16.gmra.mrb[8].mxu1 %vm360_vm4, %v4026_v17  ;;  %v635_v17 = vrot.slane %v4052_v45, 1 }
  0x7f   : > { %3078 = vmatprep.mubr.msk.bf16.mxu1 %vm3892_vm1, %v3891_v2 }
  0x80   : > { %3243 = vmatmul.mubr.msk.bf16.gmra.mrb[24].mxu0 %vm360_vm4, %v1313_v29  ;;  %v636_v25 = vsel %vm629_vm6, %v633_v18, %v635_v17  ;;  %v1555_v29 = vrot.slane %v4347_v28, 2  ;;  %v1749_v18 = vshll.u32 %v4277_v53, 16 }
  0x81   : > { %3246 = vmatprep.mubr.msk.bf16.mxu0 %vm3892_vm1, %v3891_v2 }
  0x82   : > { %v1556_v36 = vsel %vm1298_vm5, %v1553_v23, %v1555_v29 }
  0x86   : > { %3079 = vmatmul.mubr.msk.bf16.gmra.mrb[12].mxu1 %vm360_vm4, %v4052_v45  ;;  %v637_v45 = vrot.slane %v4073_v59, 1 }
  0x87   : > { %3082 = vmatprep.mubr.msk.bf16.mxu1 %vm3892_vm1, %v3891_v2 }
  0x88   : > { %3247 = vmatmul.mubr.msk.bf16.gmra.mrb[28].mxu0 %vm360_vm4, %v1315_v34  ;;  %v638_v33 = vsel %vm629_vm6, %v635_v17, %v637_v45  ;;  %v3763_v34 = vld [vmem:[%s3997_s9 + $0x58] ss:$0 sps:$4 sm:$0x33]   ;;  %v1751_v17 = vrot.slane %v1749_v18, 3 }
  0x89   : > { %3250 = vmatprep.mubr.msk.bf16.mxu0 %vm3892_vm1, %v3891_v2  ;;  %v4457_v18 = vld [vmem:[%s3997_s9 + $0x58] ss:$0 sps:$4 sm:$0x77]  }
  0x8e   : > { %3083 = vmatmul.mubr.msk.bf16.gmra.mrb[16].mxu1 %vm360_vm4, %v4073_v59  ;;  %v1557_v59 = vrot.slane %v3763_v34, 2 }
  0x8f   : > { %3086 = vmatprep.mubr.msk.bf16.mxu1 %vm3892_vm1, %v3891_v2 }
  0x90   : > { %3251 = vmatmul.mubr.msk.bf16.gmra.mrb[32].mxu0 %vm360_vm4, %v1317_v39  ;;  %v1720_v39 = vshrl.u32 %v4244_v42, 16 }
  0x91   : > { %3256 = vmatprep.mubr.msk.bf16.mxu0 %vm3892_vm1, %v3891_v2 }
  0x96   : > { %3087 = vmatmul.mubr.msk.bf16.gmra.mrb[20].mxu1 %vm360_vm4, %v4091_v16  ;;  %v1722_v16 = vrot.slane %v1720_v39, 2 }
  0x97   : > { %3090 = vmatprep.mubr.msk.bf16.mxu1 %vm3892_vm1, %v3891_v2 }
  0x98   : > { %3257 = vmatmul.mubr.msk.bf16.vlgmr.msra.gmra.mrb[0].mxu0 %vm360_vm4, %v1542_v47  ;;  %v640_v47 = vsel %vm629_vm6, %v637_v45, %v639_v37  ;;  %v1726_v42 = vor.u32 %v1725_v50, %v1722_v16  ;;  %v1773_v16 = vshrl.u32 %v4320_v13, 16  ;;  %v1776_v50 = vshll.u32 %v4320_v13, 16 }
  0x99   : > { %3293 = vmatpush3.bf16.msra.mxu0 %v1836_v49  ;;  %3260 = vmatprep.mubr.msk.bf16.mxu0 %vm3892_vm1, %v3891_v2  ;;  %v1558_v49 = vsel %vm1298_vm5, %v1555_v29, %v1557_v59  ;;  %v1767_v59 = vshll.u32 %v4303_v0, 16 }
  0x9a   : > { %3330 = vmatprep.subr.bf16.mxu0 %v3891_v2 }
  0x9b   : > { %v1769_v46 = vrot.slane %v1767_v59, 3  ;;  %v884_v59 = vrot.slane %v4204_v27, 1 }
  0x9e   : > { %3091 = vmatmul.mubr.msk.bf16.gmra.mrb[24].mxu1 %vm360_vm4, %v4106_v30 }
  0x9f   : > { %3094 = vmatprep.mubr.msk.bf16.mxu1 %vm3892_vm1, %v3891_v2 }
  0xa0   : > { %3261 = vmatmul.mubr.msk.bf16.gmra.mrb[4].mxu0 %vm360_vm4, %v1544_v51  ;;  %v1730_v51 = vrot.slane %v1728_v10, 2 }
  0xa1   : > { %3264 = vmatprep.mubr.msk.bf16.mxu0 %vm3892_vm1, %v3891_v2 }
  0xa2   : > { %v1734_v58 = vor.u32 %v1733_v54, %v1730_v51 }
  0xa6   : > { %3095 = vmatmul.mubr.msk.bf16.gmra.mrb[28].mxu1 %vm360_vm4, %v4124_v41 }
  0xa7   : > { %3098 = vmatprep.mubr.msk.bf16.mxu1 %vm3892_vm1, %v3891_v2 }
  0xa8   : > { %3265 = vmatmul.mubr.msk.bf16.gmra.mrb[8].mxu0 %vm360_vm4, %v1546_v55  ;;  %v641_v55 = vrot.slane %v4106_v30, 1  ;;  %v1735_v30 = vsel %vm1718_vm7, %v1726_v42, %v1734_v58 }
  0xa9   : > { %3268 = vmatprep.mubr.msk.bf16.mxu0 %vm3892_vm1, %v3891_v2 }
  0xae   : > { %3099 = vmatmul.mubr.msk.bf16.gmra.mrb[32].mxu1 %vm360_vm4, %v4142_v52 }
  0xaf   : > { %3104 = vmatprep.mubr.msk.bf16.mxu1 %vm3892_vm1, %v3891_v2 }
  0xb0   : > { %3269 = vmatmul.mubr.msk.bf16.gmra.mrb[12].mxu0 %vm360_vm4, %v1548_v63  ;;  %v642_v63 = vsel %vm629_vm6, %v639_v37, %v641_v55  ;;  %v1764_v37 = vshrl.u32 %v4303_v0, 16 }
  0xb1   : > { %3272 = vmatprep.mubr.msk.bf16.mxu0 %vm3892_vm1, %v3891_v2 }
  0xb2   : > { %v1766_v10 = vrot.slane %v1764_v37, 2 }
  0xb6   : > { %3105 = vmatmul.mubr.msk.bf16.vlgmr.msra.gmra.mrb[0].mxu1 %vm360_vm4, %v632_v9  ;;  %v643_v9 = vrot.slane %v4124_v41, 1  ;;  %v645_v41 = vrot.slane %v4142_v52, 1  ;;  %v647_v52 = vrot.slane %v4157_v62, 1  ;;  %v871_v62 = vrot.slane %v4017_v14, 1 }
  0xb7   : > { %3108 = vmatprep.mubr.msk.bf16.mxu1 %vm3892_vm1, %v3891_v2  ;;  %3141 = vmatpush3.bf16.msra.mxu1 %v918_v12  ;;  %v1743_v12 = vor.u32 %v1742_v6, %v1739_v4  ;;  %v1778_v14 = vrot.slane %v1776_v50, 3  ;;  %v1791_v4 = vshrl.u32 %v4347_v28, 16  ;;  %v1794_v6 = vshll.u32 %v4347_v28, 16 }
  0xb8   : > { %3368 = vmatprep.subr.bf16.mxu1 %v3891_v2  ;;  %3273 = vmatmul.mubr.msk.bf16.gmra.mrb[16].mxu0 %vm360_vm4, %v1550_v8  ;;  %v1746_v8 = vshrl.u32 %v4277_v53, 16  ;;  %v644_v19 = vsel %vm629_vm6, %v641_v55, %v643_v9  ;;  %v646_v45 = vsel %vm629_vm6, %v643_v9, %v645_v41  ;;  %v648_v39 = vsel %vm629_vm6, %v645_v41, %v647_v52 }
  0xb9   : > { %3276 = vmatprep.mubr.msk.bf16.mxu0 %vm3892_vm1, %v3891_v2  ;;  %v1775_v55 = vrot.slane %v1773_v16, 2  ;;  %v1104_v16 = vshrl.u32 %v4191_v24, 16  ;;  %v1107_v50 = vshll.u32 %v4191_v24, 16 }
  0xbb   : > { %v1779_v42 = vor.u32 %v1778_v14, %v1775_v55  ;;  %v1109_v55 = vrot.slane %v1107_v50, 2 }
  0xbe   : > { %3109 = vmatmul.mubr.msk.bf16.gmra.mrb[4].mxu1 %vm360_vm4, %v634_v20  ;;  %v1744_v20 = vsel %vm1718_vm7, %v1734_v58, %v1743_v12  ;;  %v1782_v58 = vshrl.u32 %v4334_v22, 16 }
  0xbf   : > { %3112 = vmatprep.mubr.msk.bf16.mxu1 %vm3892_vm1, %v3891_v2 }
  0xc0   : > { %3277 = vmatmul.mubr.msk.bf16.gmra.mrb[20].mxu0 %vm360_vm4, %v1552_v21  ;;  %v1748_v21 = vrot.slane %v1746_v8, 2  ;;  %v1796_v8 = vrot.slane %v1794_v6, 3 }
  0xc1   : > { %3280 = vmatprep.mubr.msk.bf16.mxu0 %vm3892_vm1, %v3891_v2 }
  0xc2   : > { %v1752_v23 = vor.u32 %v1751_v17, %v1748_v21  ;;  %v1803_v21 = vshll.u32 %v4457_v18, 16 }
  0xc4   : > { %v1753_v29 = vsel %vm1718_vm7, %v1743_v12, %v1752_v23  ;;  %v1793_v12 = vrot.slane %v1791_v4, 2 }
  0xc6   : > { %3113 = vmatmul.mubr.msk.bf16.gmra.mrb[8].mxu1 %vm360_vm4, %v636_v25  ;;  %v1755_v25 = vshrl.u32 %v4289_v57, 16 }
  0xc7   : > { %3116 = vmatprep.mubr.msk.bf16.mxu1 %vm3892_vm1, %v3891_v2 }
  0xc8   : > { %3281 = vmatmul.mubr.msk.bf16.gmra.mrb[24].mxu0 %vm360_vm4, %v1554_v7  ;;  %v1758_v7 = vshll.u32 %v4289_v57, 16 }
  0xc9   : > { %3284 = vmatprep.mubr.msk.bf16.mxu0 %vm3892_vm1, %v3891_v2 }
  0xca   : > { %v1760_v34 = vrot.slane %v1758_v7, 3 }
  0xce   : > { %3117 = vmatmul.mubr.msk.bf16.gmra.mrb[12].mxu1 %vm360_vm4, %v638_v33  ;;  %v1757_v33 = vrot.slane %v1755_v25, 2  ;;  %v1805_v25 = vrot.slane %v1803_v21, 3  ;;  %v1985_v21 = vrot.slane %v4457_v18, 3 }
  0xcf   : > { %3120 = vmatprep.mubr.msk.bf16.mxu1 %vm3892_vm1, %v3891_v2 }
  0xd0   : > { %3285 = vmatmul.mubr.msk.bf16.gmra.mrb[28].mxu0 %vm360_vm4, %v1556_v36  ;;  %v1761_v36 = vor.u32 %v1760_v34, %v1757_v33 }
  0xd1   : > { %3288 = vmatprep.mubr.msk.bf16.mxu0 %vm3892_vm1, %v3891_v2 }
  0xd2   : > { %v1762_v44 = vsel %vm1718_vm7, %v1752_v23, %v1761_v36 }
  0xd6   : > { %3121 = vmatmul.mubr.msk.bf16.gmra.mrb[16].mxu1 %vm360_vm4, %v640_v47  ;;  %v872_v47 = vrot.slane %v4020_v15, 1  ;;  %v874_v15 = vrot.slane %v4037_v26, 1  ;;  %v1784_v26 = vrot.slane %v1782_v58, 2 }
  0xd7   : > { %3124 = vmatprep.mubr.msk.bf16.mxu1 %vm3892_vm1, %v3891_v2 }
  0xd8   : > { %3289 = vmatmul.mubr.msk.bf16.gmra.mrb[32].mxu0 %vm360_vm4, %v1558_v49  ;;  %v1770_v49 = vor.u32 %v1769_v46, %v1766_v10  ;;  %v873_v51 = vsel %vm629_vm6, %v871_v62, %v872_v47  ;;  %v875_v61 = vsel %vm629_vm6, %v872_v47, %v874_v15  ;;  %v886_v10 = vrot.slane %v4216_v32, 1  ;;  %v3766_v62 = vld [vmem:[%s3997_s9 + $0x50] ss:$0 sps:$4 sm:$0x11]  }
  0xd9   : > { %3294 = vmatprep.mubr.msk.bf16.mxu0 %vm3892_vm1, %v3891_v2  ;;  %v1973_v46 = vrot.slane %v4277_v53, 3  ;;  %v1975_v53 = vrot.slane %v4289_v57, 3  ;;  %v1977_v57 = vrot.slane %v4303_v0, 3 }
  0xda   : > { %v1771_v54 = vsel %vm1718_vm7, %v1761_v36, %v1770_v49  ;;  %v1969_v36 = vrot.slane %v4247_v43, 3  ;;  %v1971_v43 = vrot.slane %v4263_v48, 3  ;;  %v887_v48 = vsel %vm629_vm6, %v884_v59, %v886_v10 }
  0xdb   : > { %v1976_v14 = vsel %vm1967_vm8, %v1973_v46, %v1975_v53 }
  0xdc   : > { %v1974_v47 = vsel %vm1967_vm8, %v1971_v43, %v1973_v46 }
  0xde   : > { %3125 = vmatmul.mubr.msk.bf16.gmra.mrb[20].mxu1 %vm360_vm4, %v642_v63  ;;  %v1780_v63 = vsel %vm1718_vm7, %v1770_v49, %v1779_v42  ;;  %v888_v49 = vrot.slane %v3766_v62, 1 }
  0xdf   : > { %3128 = vmatprep.mubr.msk.bf16.mxu1 %vm3892_vm1, %v3891_v2 }
  0xe0   : > { %3295 = vmatmul.mubr.msk.bf16.vlgmr.msra.gmra.mrb[0].mxu0 %vm360_vm4, %v1735_v30  ;;  %v1788_v30 = vor.u32 %v1787_v1, %v1784_v26  ;;  %v1122_v26 = vshrl.u32 %v4216_v32, 16  ;;  %v1125_v1 = vshll.u32 %v4216_v32, 16  ;;  %v1131_v32 = vshrl.u32 %v4228_v35, 16 }
  0xe1   : > { %3331 = vmatpush3.bf16.msra.mxu0 %v2015_v5  ;;  %3298 = vmatprep.mubr.msk.bf16.mxu0 %vm3892_vm1, %v3891_v2 }
  0xe2   : > { %v1789_v9 = vsel %vm1718_vm7, %v1779_v42, %v1788_v30  ;;  %v1116_v42 = vshll.u32 %v4204_v27, 16 }
  0xe6   : > { %3129 = vmatmul.mubr.msk.bf16.gmra.mrb[24].mxu1 %vm360_vm4, %v644_v19  ;;  %v1797_v19 = vor.u32 %v1796_v8, %v1793_v12  ;;  %v1133_v12 = vrot.slane %v1131_v32, 1 }
  0xe7   : > { %3132 = vmatprep.mubr.msk.bf16.mxu1 %vm3892_vm1, %v3891_v2 }
  0xe8   : > { %3299 = vmatmul.mubr.msk.bf16.gmra.mrb[4].mxu0 %vm360_vm4, %v1744_v20  ;;  %v1800_v20 = vshrl.u32 %v4457_v18, 16  ;;  %v1798_v41 = vsel %vm1718_vm7, %v1788_v30, %v1797_v19  ;;  %v1127_v30 = vrot.slane %v1125_v1, 2 }
  0xe9   : > { %3302 = vmatprep.mubr.msk.bf16.mxu0 %vm3892_vm1, %v3891_v2 }
  0xea   : > { %v1802_v23 = vrot.slane %v1800_v20, 2 }
  0xec   : > { %v1806_v7 = vor.u32 %v1805_v25, %v1802_v23 }
  0xee   : > { %3133 = vmatmul.mubr.msk.bf16.gmra.mrb[28].mxu1 %vm360_vm4, %v646_v45  ;;  %v1807_v33 = vsel %vm1718_vm7, %v1797_v19, %v1806_v7 }
  0xef   : > { %3136 = vmatprep.mubr.msk.bf16.mxu1 %vm3892_vm1, %v3891_v2 }
  0xf0   : > { %3303 = vmatmul.mubr.msk.bf16.gmra.mrb[8].mxu0 %vm360_vm4, %v1753_v29  ;;  %v1961_v29 = vld [vmem:[%s3997_s9 + $0x10] sm:$0x8]  ;;  %s3640_s9 = smul.u32 144, %s4666_s8 }
  0xf1   : > { %3306 = vmatprep.mubr.msk.bf16.mxu0 %vm3892_vm1, %v3891_v2  ;;  %v2903_v34 = vcombine.low %v1961_v29, %v4238_v38 }
  0xf2   : > { %s4719_s10 = scalar_lea.vmem [#allocation2], %s3640_s9 }
  0xf3   : > { %v1968_v52 = vrot.slane %v2903_v34, 3  ;;  %s2643_s12 = sshll.u32 %s4719_s10, 4  ;;  %s5067_s12 = int_to_ptr.vmem [resolvable:$true] %s2643_s12 }
  0xf4   : > { %s3767_s27 = scalar_lea.vmem %s5067_s12, 2304  ;;  %p3774_p0 = scmp.lt.s32.totalorder %s5067_s12, %s3772_s29 }
  0xf5   : > { %v1970_v38 = vsel %vm1967_vm8, %v1968_v52, %v1969_v36  ;;  %p3768_p11 = scmp.ne.s32.totalorder %s5067_s12, %s3767_s27  ;;  %p3775_p1 = scmp.lt.s32.totalorder %s3773_s30, %s3767_s27 }
  0xf6   : > { %3137 = vmatmul.mubr.msk.bf16.gmra.mrb[32].mxu1 %vm360_vm4, %v648_v39 }
  0xf7   : > { %3142 = vmatprep.mubr.msk.bf16.mxu1 %vm3892_vm1, %v3891_v2  ;;  %p3769_p12 = pnand %p3768_p11, %p3963_p5  ;;  %p3776_p2 = por %p3775_p1, %p3774_p0 }
  0xf8   : > { %3307 = vmatmul.mubr.msk.bf16.gmra.mrb[12].mxu0 %vm360_vm4, %v1762_v44  ;;  %v1972_v44 = vsel %vm1967_vm8, %v1969_v36, %v1971_v43 }
  0xf9   : > { %3310 = vmatprep.mubr.msk.bf16.mxu0 %vm3892_vm1, %v3891_v2  ;;  %p3770_p13 = pneg %p3769_p12 }
  0xfb   : > { %p3777_p3 = pnand %p3776_p2, %p3770_p13 }
  0xfe   : > { %3143 = vmatmul.mubr.msk.bf16.vlgmr.msra.gmra.mrb[0].mxu1 %vm360_vm4, %v873_v51  ;;  %v889_v51 = vsel %vm629_vm6, %v886_v10, %v888_v49 }
  0xff   : > { %3146 = vmatprep.mubr.msk.bf16.mxu1 %vm3892_vm1, %v3891_v2  ;;  %3369 = vmatpush3.bf16.msra.mxu1 %v3982_v3  ;;  %v876_v3 = vrot.slane %v4046_v40, 1  ;;  %v878_v40 = vrot.slane %v4068_v56, 1  ;;  %v880_v56 = vrot.slane %v4086_v11, 1  ;;  %v882_v11 = vrot.slane %v4191_v24, 1 }
 0x100   : > { %3311 = vmatmul.mubr.msk.bf16.gmra.mrb[16].mxu0 %vm360_vm4, %v1771_v54  ;;  %v1106_v54 = vrot.slane %v1104_v16, 1  ;;  %v1113_v24 = vshrl.u32 %v4204_v27, 16 }
 0x101   : > { %3314 = vmatprep.mubr.msk.bf16.mxu0 %vm3892_vm1, %v3891_v2  ;;  %v877_v5 = vsel %vm629_vm6, %v874_v15, %v876_v3  ;;  %v879_v17 = vsel %vm629_vm6, %v876_v3, %v878_v40  ;;  %v881_v45 = vsel %vm629_vm6, %v878_v40, %v880_v56  ;;  %v883_v37 = vsel %vm629_vm6, %v880_v56, %v882_v11 }
 0x102   : > { %v885_v39 = vsel %vm629_vm6, %v882_v11, %v884_v59  ;;  %v1110_v15 = vor.u32 %v1109_v55, %v1106_v54  ;;  %v1115_v60 = vrot.slane %v1113_v24, 1  ;;  %v1124_v3 = vrot.slane %v1122_v26, 1 }
 0x104   : > { %v1111_v58 = vsel %vm1049_vm3, %v4111_v31, %v1110_v15  ;;  %v1979_v31 = vrot.slane %v4320_v13, 3  ;;  %v1128_v6 = vor.u32 %v1127_v30, %v1124_v3  ;;  %v1981_v13 = vrot.slane %v4334_v22, 3 }
 0x106   : > { %3147 = vmatmul.mubr.msk.bf16.gmra.mrb[4].mxu1 %vm360_vm4, %v875_v61  ;;  %v1118_v61 = vrot.slane %v1116_v42, 2  ;;  %v1980_v4 = vsel %vm1967_vm8, %v1977_v57, %v1979_v31  ;;  %v1982_v40 = vsel %vm1967_vm8, %v1979_v31, %v1981_v13 }
 0x107   : > { %3150 = vmatprep.mubr.msk.bf16.mxu1 %vm3892_vm1, %v3891_v2 }
 0x108   : > { %3315 = vmatmul.mubr.msk.bf16.gmra.mrb[20].mxu0 %vm360_vm4, %v1780_v63  ;;  %v1978_v63 = vsel %vm1967_vm8, %v1975_v53, %v1977_v57  ;;  %v1119_v27 = vor.u32 %v1118_v61, %v1115_v60 }
 0x109   : > { %3318 = vmatprep.mubr.msk.bf16.mxu0 %vm3892_vm1, %v3891_v2 }
 0x10a   : > { %v1120_v0 = vsel %vm1049_vm3, %v1110_v15, %v1119_v27 }
 0x10e   : > { %3151 = vmatmul.mubr.msk.bf16.gmra.mrb[8].mxu1 %vm360_vm4, %v877_v5  ;;  %v1134_v5 = vshll.u32 %v4228_v35, 16  ;;  %v1983_v35 = vrot.slane %v4347_v28, 3 }
 0x10f   : > { %3154 = vmatprep.mubr.msk.bf16.mxu1 %vm3892_vm1, %v3891_v2 }
 0x110   : > { %3319 = vmatmul.mubr.msk.bf16.gmra.mrb[24].mxu0 %vm360_vm4, %v1789_v9  ;;  %v1129_v9 = vsel %vm1049_vm3, %v1119_v27, %v1128_v6  ;;  %v1136_v8 = vrot.slane %v1134_v5, 2  ;;  %v1984_v20 = vsel %vm1967_vm8, %v1981_v13, %v1983_v35 }
 0x111   : > { %3322 = vmatprep.mubr.msk.bf16.mxu0 %vm3892_vm1, %v3891_v2 }
 0x112   : > { %v1137_v19 = vor.u32 %v1136_v8, %v1133_v12 }
 0x114   : > { %v1138_v22 = vsel %vm1049_vm3, %v1128_v6, %v1137_v19 }
 0x116   : > { %3155 = vmatmul.mubr.msk.bf16.gmra.mrb[12].mxu1 %vm360_vm4, %v879_v17  ;;  %v1986_v17 = vsel %vm1967_vm8, %v1983_v35, %v1985_v21 }
 0x117   : > { %3158 = vmatprep.mubr.msk.bf16.mxu1 %vm3892_vm1, %v3891_v2 }
 0x118   : > { %3323 = vmatmul.mubr.msk.bf16.gmra.mrb[28].mxu0 %vm360_vm4, %v1798_v41  ;;  %v2158_v41 = vlaneseq }
 0x119   : > { %3326 = vmatprep.mubr.msk.bf16.mxu0 %vm3892_vm1, %v3891_v2 }
 0x11a   : > { %v4574_v25 = vshrl.u32 %v2158_v41, 7 }
 0x11c   : > { %v2161_v34 = vadd.s32 16, %v4574_v25  ;;  %v4613_v15 = vadd.s32 48, %v4574_v25  ;;  %v4634_v13 = vadd.s32 64, %v4574_v25 }
 0x11e   : > { %3159 = vmatmul.mubr.msk.bf16.gmra.mrb[16].mxu1 %vm360_vm4, %v881_v45  ;;  %v2160_v45 = vadd.s32 8, %v4574_v25  ;;  %v4591_v59 = vmul.u32.u64.low 3817748708, %v2161_v34  ;;  %v4592_v43 = vmul.u32.u64.high 3817748708, %v2161_v34, %v4591_v59 }
 0x11f   : > { %3162 = vmatprep.mubr.msk.bf16.mxu1 %vm3892_vm1, %v3891_v2  ;;  %v4624_v27 = vmul.u32.u64.low 3817748708, %v4613_v15  ;;  %v4625_v26 = vmul.u32.u64.high 3817748708, %v4613_v15, %v4624_v27 }
 0x120   : > { %3327 = vmatmul.mubr.msk.bf16.gmra.mrb[32].mxu0 %vm360_vm4, %v1807_v33  ;;  %v4580_v29 = vmul.u32.u64.low 3817748708, %v4574_v25  ;;  %v4581_v33 = vmul.u32.u64.high 3817748708, %v4574_v25, %v4580_v29  ;;  %v4586_v52 = vmul.u32.u64.low 3817748708, %v2160_v45  ;;  %v4587_v36 = vmul.u32.u64.high 3817748708, %v2160_v45, %v4586_v52 }
 0x121   : > { %3332 = vmatprep.mubr.msk.bf16.mxu0 %vm3892_vm1, %v3891_v2  ;;  %v4657_v29 = vadd.s32 72, %v4574_v25 }
 0x122   : > { %v2183_v10 = vshrl.u32 %v4581_v33, 4  ;;  %v2194_v49 = vshrl.u32 %v4587_v36, 4 }
 0x124   : > { %v2184_v55 = vmul.u32 18, %v2183_v10  ;;  %v2195_v24 = vmul.u32 18, %v2194_v49 }
 0x126   : > { %3163 = vmatmul.mubr.msk.bf16.gmra.mrb[20].mxu1 %vm360_vm4, %v883_v37  ;;  %v2196_v31 = vsub.s32 %v2160_v45, %v2195_v24 }
 0x127   : > { %3166 = vmatprep.mubr.msk.bf16.mxu1 %vm3892_vm1, %v3891_v2 }
 0x128   : > { %3333 = vmatmul.mubr.msk.bf16.vlgmr.msra.gmra.mrb[0].mxu0 %vm360_vm4, %v1970_v38  ;;  %vm2376_vm11 = vcmp.ne.s32.totalorder %v2196_v31, 0  ;;  %vm2394_vm12 = vcmp.lt.s32.totalorder %v2196_v31, 0 }
 0x129   : > { %3336 = vmatprep.mubr.msk.bf16.mxu0 %vm3892_vm1, %v3891_v2  ;;  %vm4647_vm14 = vmand %vm2394_vm12, %vm2376_vm11 }
 0x12e   : > { %3167 = vmatmul.mubr.msk.bf16.gmra.mrb[24].mxu1 %vm360_vm4, %v885_v39  ;;  %v2162_v39 = vadd.s32 24, %v4574_v25 }
 0x12f   : > { %3170 = vmatprep.mubr.msk.bf16.mxu1 %vm3892_vm1, %v3891_v2 }
 0x130   : > { %3337 = vmatmul.mubr.msk.bf16.gmra.mrb[4].mxu0 %vm360_vm4, %v1972_v44  ;;  %v2163_v44 = vadd.s32 32, %v4574_v25 }
 0x131   : > { %3340 = vmatprep.mubr.msk.bf16.mxu0 %vm3892_vm1, %v3891_v2 }
 0x132   : > { %v4603_v16 = vmul.u32.u64.low 3817748708, %v2163_v44  ;;  %v4604_v50 = vmul.u32.u64.high 3817748708, %v2163_v44, %v4603_v16 }
 0x136   : > { %3171 = vmatmul.mubr.msk.bf16.gmra.mrb[28].mxu1 %vm360_vm4, %v887_v48  ;;  %v4599_v48 = vmul.u32.u64.low 3817748708, %v2162_v39  ;;  %v4600_v62 = vmul.u32.u64.high 3817748708, %v2162_v39, %v4599_v48 }
 0x137   : > { %3174 = vmatprep.mubr.msk.bf16.mxu1 %vm3892_vm1, %v3891_v2 }
 0x138   : > { %3341 = vmatmul.mubr.msk.bf16.gmra.mrb[8].mxu0 %vm360_vm4, %v1974_v47 }
 0x139   : > { %3344 = vmatprep.mubr.msk.bf16.mxu0 %vm3892_vm1, %v3891_v2 }
 0x13e   : > { %3175 = vmatmul.mubr.msk.bf16.gmra.mrb[32].mxu1 %vm360_vm4, %v889_v51  ;;  %v4609_v51 = vadd.s32 40, %v4574_v25 }
 0x13f   : > { %3200 = vmatprep.mubr.msk.bf16.mxu1 %vm3892_vm1, %v3891_v2 }
 0x140   : > { %3345 = vmatmul.mubr.msk.bf16.gmra.mrb[12].mxu0 %vm360_vm4, %v1976_v14  ;;  %v2205_v14 = vshrl.u32 %v4592_v43, 4  ;;  %v4616_v42 = vmul.u32.u64.low 3817748708, %v4609_v51  ;;  %v4617_v57 = vmul.u32.u64.high 3817748708, %v4609_v51, %v4616_v42 }
 0x141   : > { %3348 = vmatprep.mubr.msk.bf16.mxu0 %vm3892_vm1, %v3891_v2 }
 0x142   : > { %v2206_v61 = vmul.u32 18, %v2205_v14 }
 0x144   : > { %v2207_v6 = vsub.s32 %v2161_v34, %v2206_v61 }
 0x146   : > { %3201 = vmatmul.mubr.msk.bf16.vlgmr.msra.gmra.mrb[20].mxu1 %vm360_vm4, %v1111_v58  ;;  %v2185_v58 = vsub.s32 %v4574_v25, %v2184_v55  ;;  %vm2377_vm15 = vcmp.ne.s32.totalorder %v2207_v6, 0  ;;  %vm2395_vm0 = vcmp.lt.s32.totalorder %v2207_v6, 0 }
 0x147   : > { %3204 = vmatprep.mubr.msk.bf16.mxu1 %vm3892_vm1, %v3891_v2 }
 0x148   : > { %3349 = vmatmul.mubr.msk.bf16.gmra.mrb[16].mxu0 %vm360_vm4, %v1978_v63  ;;  %v2216_v63 = vshrl.u32 %v4600_v62, 4  ;;  %vm2375_vm9 = vcmp.ne.s32.totalorder %v2185_v58, 0  ;;  %vm2393_vm10 = vcmp.lt.s32.totalorder %v2185_v58, 0  ;;  %v2429_v8 = vadd.s32 18, %v2185_v58 }
 0x149   : > { %3352 = vmatprep.mubr.msk.bf16.mxu0 %vm3892_vm1, %v3891_v2  ;;  %vm4637_vm13 = vmand %vm2393_vm10, %vm2375_vm9 }
 0x14a   : > { %v2217_v32 = vmul.u32 18, %v2216_v63  ;;  %v2447_v52 = vsel %vm4637_vm13, %v2429_v8, %v2185_v58  ;;  %v4704_v58 = vadd.s32 80, %v4574_v25 }
 0x14b   : > { %vm2465_vm6 = vcmp.lt.s32.totalorder %v2447_v52, 16 }
 0x14c   : > { %v2218_v21 = vsub.s32 %v2162_v39, %v2217_v32 }
 0x14e   : > { %3205 = vmatmul.mubr.msk.bf16.gmra.mrb[24].mxu1 %vm360_vm4, %v1120_v0  ;;  %v2227_v0 = vshrl.u32 %v4604_v50, 4  ;;  %vm2378_vm2 = vcmp.ne.s32.totalorder %v2218_v21, 0  ;;  %vm2396_vm3 = vcmp.lt.s32.totalorder %v2218_v21, 0 }
 0x14f   : > { %3208 = vmatprep.mubr.msk.bf16.mxu1 %vm3892_vm1, %v3891_v2  ;;  %vm4684_vm8 = vmand %vm2396_vm3, %vm2378_vm2 }
 0x150   : > { %3353 = vmatmul.mubr.msk.bf16.gmra.mrb[20].mxu0 %vm360_vm4, %v1980_v4  ;;  %v4631_v4 = vadd.s32 56, %v4574_v25  ;;  %v2228_v5 = vmul.u32 18, %v2227_v0 }
 0x151   : > { %3356 = vmatprep.mubr.msk.bf16.mxu0 %vm3892_vm1, %v3891_v2 }
 0x152   : > { %v4642_v19 = vmul.u32.u64.low 3817748708, %v4631_v4  ;;  %v4643_v35 = vmul.u32.u64.high 3817748708, %v4631_v4, %v4642_v19 }
 0x154   : > { %v2260_v16 = vshrl.u32 %v4643_v35, 4 }
 0x156   : > { %3209 = vmatmul.mubr.msk.bf16.gmra.mrb[28].mxu1 %vm360_vm4, %v1129_v9  ;;  %v2238_v9 = vshrl.u32 %v4617_v57, 4 }
 0x157   : > { %3212 = vmatprep.mubr.msk.bf16.mxu1 %vm3892_vm1, %v3891_v2 }
 0x158   : > { %3357 = vmatmul.mubr.msk.bf16.gmra.mrb[24].mxu0 %vm360_vm4, %v1982_v40  ;;  %v2430_v40 = vadd.s32 18, %v2196_v31  ;;  %v2239_v34 = vmul.u32 18, %v2238_v9 }
 0x159   : > { %3360 = vmatprep.mubr.msk.bf16.mxu0 %vm3892_vm1, %v3891_v2 }
 0x15a   : > { %v2448_v36 = vsel %vm4647_vm14, %v2430_v40, %v2196_v31  ;;  %v4679_v10 = vsub.s32 %v4609_v51, %v2239_v34  ;;  %v2913_v51 = vsel %vm2465_vm6, 1.0, %v3891_v2 }
 0x15b   : > { %vm2466_vm7 = vcmp.lt.s32.totalorder %v2448_v36, 16 }
 0x15c   : > { %v2914_v14 = vsel %vm2466_vm7, 1.0, %v3891_v2  ;;  %vm2380_vm11 = vcmp.ne.s32.totalorder %v4679_v10, 0  ;;  %vm2398_vm12 = vcmp.lt.s32.totalorder %v4679_v10, 0  ;;  %v2434_v27 = vadd.s32 18, %v4679_v10 }
 0x15e   : > { %3213 = vmatmul.mubr.msk.bf16.gmra.mrb[32].mxu1 %vm360_vm4, %v1138_v22 }
 0x160   : > { %3361 = vmatmul.mubr.msk.bf16.gmra.mrb[28].mxu0 %vm360_vm4, %v1984_v20 }
 0x161   : > { %3364 = vmatprep.mubr.msk.bf16.mxu0 %vm3892_vm1, %v3891_v2  ;;  %vm4670_vm1 = vmand %vm2395_vm0, %vm2377_vm15 }
 0x162   : > { %vm4709_vm15 = vmand %vm2398_vm12, %vm2380_vm11 }
 0x168   : > { %3365 = vmatmul.mubr.msk.bf16.gmra.mrb[32].mxu0 %vm360_vm4, %v1986_v17  ;;  %v2249_v17 = vshrl.u32 %v4625_v26, 4 }
 0x16a   : > { %v2250_v43 = vmul.u32 18, %v2249_v17 }
 0x1d1   : > { %v4572_v23 = vpop.f32.mrb[0].mxu1 }
 0x1d2   : > { %v3144_v28 = vpop.f32.mrb[1].mxu1 }
 0x1d3   : > { %v4576_v56 = vpop.f32.mrb[2].mxu1  ;;  %v2229_v28 = vsub.s32 %v2163_v44, %v2228_v5  ;;  %v4675_v39 = vmul.u32.u64.low 3817748708, %v4657_v29  ;;  %v4676_v44 = vmul.u32.u64.high 3817748708, %v4657_v29, %v4675_v39 }
 0x1d4   : > { %v3145_v7 = vpop.f32.mrb[3].mxu1 }
 0x1d5   : > { %v4653_v7 = vmul.u32.u64.low 3817748708, %v4634_v13  ;;  %v4654_v45 = vmul.u32.u64.high 3817748708, %v4634_v13, %v4653_v7  ;;  %vm2379_vm4 = vcmp.ne.s32.totalorder %v2229_v28, 0  ;;  %vm2397_vm5 = vcmp.lt.s32.totalorder %v2229_v28, 0 }
 0x1d6   : > { %v2433_v49 = vadd.s32 18, %v2229_v28  ;;  %vm4689_vm9 = vmand %vm2397_vm5, %vm2379_vm4 }
 0x1d7   : > { %v2271_v55 = vshrl.u32 %v4654_v45, 4 }
 0x1d8   : > { %v2451_v57 = vsel %vm4689_vm9, %v2433_v49, %v2229_v28 }
 0x1d9   : > { %v4583_v18 = vpop.f32.mrb[4].mxu1  ;;  %v2272_v0 = vmul.u32 18, %v2271_v55 }
 0x1da   : > { %v3148_v11 = vpop.f32.mrb[5].mxu1 }
 0x1db   : > { %v4589_v37 = vpop.f32.mrb[6].mxu1  ;;  %v4749_v28 = vsub.s32 %v4634_v13, %v2272_v0  ;;  %v4763_v13 = vadd.s32 96, %v4574_v25 }
 0x1dc   : > { %v3149_v38 = vpop.f32.mrb[7].mxu1 }
 0x1dd   : > { %v2431_v38 = vadd.s32 18, %v2207_v6  ;;  %vm2383_vm7 = vcmp.ne.s32.totalorder %v4749_v28, 0  ;;  %vm2401_vm9 = vcmp.lt.s32.totalorder %v4749_v28, 0 }
 0x1de   : > { %vm4813_vm12 = vmand %vm2401_vm9, %vm2383_vm7 }
 0x1df   : > { %v2449_v48 = vsel %vm4670_vm1, %v2431_v38, %v2207_v6  ;;  %v4715_v6 = vadd.s32 88, %v4574_v25  ;;  %vm4727_vm1 = vcmp.lt.s32.totalorder %v2451_v57, 16 }
 0x1e0   : > { %vm2467_vm10 = vcmp.lt.s32.totalorder %v2449_v48, 16 }
 0x1e1   : > { %v4597_v46 = vpop.f32.mrb[8].mxu1 }
 0x1e2   : > { %v3152_v47 = vpop.f32.mrb[9].mxu1 }
 0x1e3   : > { %v4606_v53 = vpop.f32.mrb[10].mxu1  ;;  %v2432_v47 = vadd.s32 18, %v2218_v21 }
 0x1e4   : > { %v3153_v54 = vpop.f32.mrb[11].mxu1 }
 0x1e5   : > { %v2251_v54 = vsub.s32 %v4613_v15, %v2250_v43  ;;  %v2450_v42 = vsel %vm4684_vm8, %v2432_v47, %v2218_v21  ;;  %v2261_v15 = vmul.u32 18, %v2260_v16 }
 0x1e6   : > { %vm4723_vm0 = vcmp.lt.s32.totalorder %v2450_v42, 16  ;;  %v4799_v42 = vadd.s32 104, %v4574_v25 }
 0x1e7   : > { %vm2381_vm13 = vcmp.ne.s32.totalorder %v2251_v54, 0  ;;  %vm2399_vm14 = vcmp.lt.s32.totalorder %v2251_v54, 0  ;;  %v2435_v12 = vadd.s32 18, %v2251_v54  ;;  %v4738_v19 = vsub.s32 %v4631_v4, %v2261_v15 }
 0x1e8   : > { %vm4733_vm2 = vmand %vm2399_vm14, %vm2381_vm13  ;;  %v4752_v45 = vmul.u32.u64.low 3817748708, %v4715_v6  ;;  %v4753_v4 = vmul.u32.u64.high 3817748708, %v4715_v6, %v4752_v45  ;;  %v2916_v59 = vsel %vm4723_vm0, 1.0, %v3891_v2 }
 0x1e9   : > { %v4620_v60 = vpop.f32.mrb[12].mxu1  ;;  %v2453_v36 = vsel %vm4733_vm2, %v2435_v12, %v2251_v54  ;;  %vm2382_vm3 = vcmp.ne.s32.totalorder %v4738_v19, 0  ;;  %vm2400_vm4 = vcmp.lt.s32.totalorder %v4738_v19, 0  ;;  %v2436_v49 = vadd.s32 18, %v4738_v19 }
 0x1ea   : > { %v3156_v1 = vpop.f32.mrb[13].mxu1  ;;  %vm4773_vm6 = vcmp.lt.s32.totalorder %v2453_v36, 16  ;;  %vm4788_vm8 = vmand %vm2400_vm4, %vm2382_vm3  ;;  %v4819_v9 = vmul.u32.u64.low 3817748708, %v4799_v42  ;;  %v4820_v12 = vmul.u32.u64.high 3817748708, %v4799_v42, %v4819_v9 }
 0x1eb   : > { %v4628_v3 = vpop.f32.mrb[14].mxu1  ;;  %v2915_v1 = vsel %vm2467_vm10, 1.0, %v3891_v2 }
 0x1ec   : > { %v3157_v30 = vpop.f32.mrb[15].mxu1 }
 0x1ed   : > { %v2282_v30 = vshrl.u32 %v4676_v44, 4 }
 0x1ef   : > { %v2283_v7 = vmul.u32 18, %v2282_v30  ;;  %v2437_v30 = vadd.s32 18, %v4749_v28 }
 0x1f1   : > { %v4645_v22 = vpop.f32.mrb[16].mxu1 }
 0x1f2   : > { %v3160_v41 = vpop.f32.mrb[17].mxu1 }
 0x1f3   : > { %v4659_v33 = vpop.f32.mrb[18].mxu1  ;;  %v2452_v41 = vsel %vm4709_vm15, %v2434_v27, %v4679_v10  ;;  %v2917_v10 = vsel %vm4727_vm1, 1.0, %v3891_v2  ;;  %v2304_v27 = vshrl.u32 %v4753_v4, 4 }
 0x1f4   : > { %v3161_v11 = vpop.f32.mrb[19].mxu1  ;;  %vm4769_vm5 = vcmp.lt.s32.totalorder %v2452_v41, 16 }
 0x1fb   : > { %v2051_v24 = vpop.f32.mrb[0].mxu0 }
 0x1fc   : > { %v3370_v61 = vadd.f32 %v2051_v24, %v4572_v23  ;;  %v3334_v63 = vpop.f32.mrb[1].mxu0 }
 0x1fd   : > { %v2054_v26 = vpop.f32.mrb[2].mxu0  ;;  %v2454_v63 = vsel %vm4788_vm8, %v2436_v49, %v4738_v19 }
 0x1fe   : > { %2140 = vst [vmem:[%s4719_s10] sm:$0xff] %v3370_v61  ;;  %v2561_v23 = vmul.f32 %v3370_v61, %v3370_v61  ;;  %v3371_v32 = vadd.f32 %v2054_v26, %v4576_v56  ;;  %v3335_v5 = vpop.f32.mrb[3].mxu0  ;;  %v4741_v56 = vmul.u32.u64.low 3817748708, %v4704_v58  ;;  %v4742_v35 = vmul.u32.u64.high 3817748708, %v4704_v58, %v4741_v56 }
 0x1ff   : > { %v2519_v20 = vmul.f32 %v3370_v61, %v2913_v51  ;;  %vm4842_vm14 = vcmp.lt.s32.totalorder %v2454_v63, 16 }
 0x200   : > { %2141 = vst [vmem:[%s4719_s10 + $0x8] sm:$0xff] %v3371_v32  ;;  %v2520_v21 = vmul.f32 %v3371_v32, %v2914_v14  ;;  %v2562_v17 = vmul.f32 %v3371_v32, %v3371_v32  ;;  %v2579_v34 = vmul.f32 %v2913_v51, %v2561_v23 }
 0x202   : > { %v2537_v11 = vadd.f32 %v2520_v21, %v2519_v20  ;;  %v2580_v52 = vmul.f32 %v2914_v14, %v2562_v17  ;;  %v2293_v14 = vshrl.u32 %v4742_v35, 4  ;;  %v2918_v20 = vsel %vm4769_vm5, 1.0, %v3891_v2 }
 0x203   : > { %v2059_v38 = vpop.f32.mrb[4].mxu0  ;;  %v2919_v21 = vsel %vm4773_vm6, 1.0, %v3891_v2  ;;  %v4838_v17 = vadd.s32 112, %v4574_v25 }
 0x204   : > { %v2597_v43 = vadd.f32 %v2580_v52, %v2579_v34  ;;  %v3372_v39 = vadd.f32 %v2059_v38, %v4583_v18  ;;  %v3338_v44 = vpop.f32.mrb[5].mxu0  ;;  %v4780_v18 = vsub.s32 %v4657_v29, %v2283_v7  ;;  %v2294_v5 = vmul.u32 18, %v2293_v14 }
 0x205   : > { %v2062_v62 = vpop.f32.mrb[6].mxu0  ;;  %v4795_v29 = vmul.u32.u64.low 3817748708, %v4763_v13  ;;  %v4796_v24 = vmul.u32.u64.high 3817748708, %v4763_v13, %v4795_v29 }
 0x206   : > { %2142 = vst [vmem:[%s4719_s10 + $0x10] sm:$0xff] %v3372_v39  ;;  %v2521_v16 = vmul.f32 %v3372_v39, %v2915_v1  ;;  %v2563_v50 = vmul.f32 %v3372_v39, %v3372_v39  ;;  %v3373_v54 = vadd.f32 %v2062_v62, %v4589_v37  ;;  %v3339_v51 = vpop.f32.mrb[7].mxu0  ;;  %vm2384_vm10 = vcmp.ne.s32.totalorder %v4780_v18, 0 }
 0x207   : > { %vm2402_vm11 = vcmp.lt.s32.totalorder %v4780_v18, 0  ;;  %v2438_v32 = vadd.s32 18, %v4780_v18  ;;  %v4853_v36 = vsub.s32 %v4704_v58, %v2294_v5  ;;  %v2315_v38 = vshrl.u32 %v4796_v24, 4 }
 0x208   : > { %v2538_v37 = vadd.f32 %v2537_v11, %v2521_v16  ;;  %v2581_v57 = vmul.f32 %v2915_v1, %v2563_v50  ;;  %2143 = vst [vmem:[%s4719_s10 + $0x18] sm:$0xff] %v3373_v54  ;;  %v2522_v15 = vmul.f32 %v3373_v54, %v2916_v59  ;;  %v2564_v61 = vmul.f32 %v3373_v54, %v3373_v54  ;;  %vm4827_vm13 = vmand %vm2402_vm11, %vm2384_vm10 }
 0x209   : > { %v2455_v11 = vsel %vm4813_vm12, %v2437_v30, %v4749_v28  ;;  %v2456_v52 = vsel %vm4827_vm13, %v2438_v32, %v4780_v18  ;;  %v4861_v48 = vmul.u32.u64.low 3817748708, %v4838_v17  ;;  %v4862_v28 = vmul.u32.u64.high 3817748708, %v4838_v17, %v4861_v48 }
 0x20a   : > { %v2598_v26 = vadd.f32 %v2597_v43, %v2581_v57  ;;  %v2539_v31 = vadd.f32 %v2538_v37, %v2522_v15  ;;  %v2582_v0 = vmul.f32 %v2916_v59, %v2564_v61  ;;  %v4865_v62 = vadd.s32 120, %v4574_v25 }
 0x20b   : > { %v2067_v1 = vpop.f32.mrb[8].mxu0  ;;  %vm4870_vm15 = vcmp.lt.s32.totalorder %v2455_v11, 16  ;;  %vm4874_vm0 = vcmp.lt.s32.totalorder %v2456_v52, 16  ;;  %v2316_v50 = vmul.u32 18, %v2315_v38  ;;  %v2326_v54 = vshrl.u32 %v4820_v12, 4 }
 0x20c   : > { %v2599_v8 = vadd.f32 %v2598_v26, %v2582_v0  ;;  %v3374_v40 = vadd.f32 %v2067_v1, %v4597_v46  ;;  %v3342_v19 = vpop.f32.mrb[9].mxu0  ;;  %v2305_v46 = vmul.u32 18, %v2304_v27  ;;  %vm2385_vm1 = vcmp.ne.s32.totalorder %v4853_v36, 0 }
 0x20d   : > { %v2070_v35 = vpop.f32.mrb[10].mxu0  ;;  %vm2403_vm2 = vcmp.lt.s32.totalorder %v4853_v36, 0  ;;  %v4884_v24 = vmul.u32.u64.low 3817748708, %v4865_v62  ;;  %v4885_v37 = vmul.u32.u64.high 3817748708, %v4865_v62, %v4884_v24  ;;  %v4888_v57 = vadd.s32 128, %v4574_v25 }
 0x20e   : > { %2144 = vst [vmem:[%s4719_s10 + $0x20] sm:$0xff] %v3374_v40  ;;  %v2523_v41 = vmul.f32 %v3374_v40, %v2917_v10  ;;  %v2565_v7 = vmul.f32 %v3374_v40, %v3374_v40  ;;  %v3375_v45 = vadd.f32 %v2070_v35, %v4606_v53  ;;  %v3343_v4 = vpop.f32.mrb[11].mxu0  ;;  %v4858_v44 = vsub.s32 %v4715_v6, %v2305_v46  ;;  %vm4903_vm5 = vmand %vm2403_vm2, %vm2385_vm1 }
 0x20f   : > { %v2439_v27 = vadd.s32 18, %v4853_v36  ;;  %v2327_v0 = vmul.u32 18, %v2326_v54  ;;  %v2337_v12 = vshrl.u32 %v4862_v28, 4  ;;  %v4919_v19 = vadd.s32 136, %v4574_v25 }
 0x210   : > { %v2540_v59 = vadd.f32 %v2539_v31, %v2523_v41  ;;  %v2583_v53 = vmul.f32 %v2917_v10, %v2565_v7  ;;  %2145 = vst [vmem:[%s4719_s10 + $0x28] sm:$0xff] %v3375_v45  ;;  %v2524_v43 = vmul.f32 %v3375_v45, %v2918_v20  ;;  %v2566_v39 = vmul.f32 %v3375_v45, %v3375_v45 }
 0x211   : > { %v2920_v10 = vsel %vm4842_vm14, 1.0, %v3891_v2  ;;  %vm2386_vm3 = vcmp.ne.s32.totalorder %v4858_v44, 0  ;;  %vm2404_vm4 = vcmp.lt.s32.totalorder %v4858_v44, 0  ;;  %v2440_v26 = vadd.s32 18, %v4858_v44 }
 0x212   : > { %v2600_v47 = vadd.f32 %v2599_v8, %v2583_v53  ;;  %v2541_v58 = vadd.f32 %v2540_v59, %v2524_v43  ;;  %v2584_v49 = vmul.f32 %v2918_v20, %v2566_v39  ;;  %v4896_v31 = vsub.s32 %v4763_v13, %v2316_v50  ;;  %vm4909_vm6 = vmand %vm2404_vm4, %vm2386_vm3 }
 0x213   : > { %v2075_v18 = vpop.f32.mrb[12].mxu0  ;;  %v4915_v8 = vmul.u32.u64.low 3817748708, %v4888_v57  ;;  %v4916_v40 = vmul.u32.u64.high 3817748708, %v4888_v57, %v4915_v8  ;;  %v2921_v41 = vsel %vm4870_vm15, 1.0, %v3891_v2  ;;  %v2922_v7 = vsel %vm4874_vm0, 1.0, %v3891_v2 }
 0x214   : > { %v2601_v51 = vadd.f32 %v2600_v47, %v2584_v49  ;;  %v3376_v55 = vadd.f32 %v2075_v18, %v4620_v60  ;;  %v3346_v14 = vpop.f32.mrb[13].mxu0  ;;  %v2457_v25 = vsel %vm4903_vm5, %v2439_v27, %v4853_v36  ;;  %v4931_v4 = vsub.s32 %v4799_v42, %v2327_v0 }
 0x215   : > { %v2078_v29 = vpop.f32.mrb[14].mxu0  ;;  %v2458_v38 = vsel %vm4909_vm6, %v2440_v26, %v4858_v44  ;;  %vm2387_vm7 = vcmp.ne.s32.totalorder %v4896_v31, 0  ;;  %v2338_v53 = vmul.u32 18, %v2337_v12  ;;  %v2348_v43 = vshrl.u32 %v4885_v37, 4 }
 0x216   : > { %2146 = vst [vmem:[%s4719_s10 + $0x30] sm:$0xff] %v3376_v55  ;;  %v2525_v15 = vmul.f32 %v3376_v55, %v2919_v21  ;;  %v2567_v61 = vmul.f32 %v3376_v55, %v3376_v55  ;;  %v3377_v60 = vadd.f32 %v2078_v29, %v4628_v3  ;;  %v3347_v63 = vpop.f32.mrb[15].mxu0  ;;  %vm2405_vm8 = vcmp.lt.s32.totalorder %v4896_v31, 0 }
 0x217   : > { %v4940_v36 = vmul.u32.u64.low 3817748708, %v4919_v19  ;;  %v4941_v39 = vmul.u32.u64.high 3817748708, %v4919_v19, %v4940_v36  ;;  %vm4946_vm9 = vcmp.lt.s32.totalorder %v2457_v25, 16  ;;  %vm4950_vm10 = vcmp.lt.s32.totalorder %v2458_v38, 16  ;;  %vm4959_vm12 = vmand %vm2405_vm8, %vm2387_vm7 }
 0x218   : > { %v2542_v30 = vadd.f32 %v2541_v58, %v2525_v15  ;;  %v2585_v1 = vmul.f32 %v2919_v21, %v2567_v61  ;;  %2147 = vst [vmem:[%s4719_s10 + $0x38] sm:$0xff] %v3377_v60  ;;  %v2526_v23 = vmul.f32 %v3377_v60, %v2920_v10  ;;  %v2568_v32 = vmul.f32 %v3377_v60, %v3377_v60 }
 0x219   : > { %v1243_v5 = vpop.f32.mrb[20].mxu1  ;;  %v2441_v58 = vadd.s32 18, %v4896_v31  ;;  %vm2388_vm11 = vcmp.ne.s32.totalorder %v4931_v4, 0  ;;  %vm2406_vm13 = vcmp.lt.s32.totalorder %v4931_v4, 0  ;;  %v4965_v54 = vsub.s32 %v4838_v17, %v2338_v53 }
 0x21a   : > { %v3202_v9 = vpop.f32.mrb[21].mxu1  ;;  %v2602_v56 = vadd.f32 %v2601_v51, %v2585_v1  ;;  %v2543_v35 = vadd.f32 %v2542_v30, %v2526_v23  ;;  %v2586_v20 = vmul.f32 %v2920_v10, %v2568_v32  ;;  %v2349_v51 = vmul.u32 18, %v2348_v43  ;;  %vm4982_vm14 = vmand %vm2406_vm13, %vm2388_vm11 }
 0x21b   : > { %v1246_v21 = vpop.f32.mrb[22].mxu1  ;;  %v2083_v46 = vpop.f32.mrb[16].mxu0  ;;  %v2359_v55 = vshrl.u32 %v4916_v40, 4  ;;  %v2923_v61 = vsel %vm4946_vm9, 1.0, %v3891_v2  ;;  %v2442_v63 = vadd.s32 18, %v4931_v4  ;;  %v2924_v0 = vsel %vm4950_vm10, 1.0, %v3891_v2 }
 0x21c   : > { %v3203_v45 = vpop.f32.mrb[23].mxu1  ;;  %v2603_v34 = vadd.f32 %v2602_v56, %v2586_v20  ;;  %v3378_v11 = vadd.f32 %v2083_v46, %v4645_v22  ;;  %v3350_v52 = vpop.f32.mrb[17].mxu0  ;;  %v2459_v30 = vsel %vm4959_vm12, %v2441_v58, %v4896_v31  ;;  %vm2389_vm15 = vcmp.ne.s32.totalorder %v4965_v54, 0 }
 0x21d   : > { %v2086_v59 = vpop.f32.mrb[18].mxu0  ;;  %v4988_v32 = vsub.s32 %v4865_v62, %v2349_v51  ;;  %v2370_v3 = vshrl.u32 %v4941_v39, 4  ;;  %vm2407_vm0 = vcmp.lt.s32.totalorder %v4965_v54, 0  ;;  %vm4993_vm1 = vcmp.lt.s32.totalorder %v2459_v30, 16 }
 0x21e   : > { %2148 = vst [vmem:[%s4719_s10 + $0x40] sm:$0xff] %v3378_v11  ;;  %v2527_v42 = vmul.f32 %v3378_v11, %v2921_v41  ;;  %v2569_v48 = vmul.f32 %v3378_v11, %v3378_v11  ;;  %v3379_v22 = vadd.f32 %v2086_v59, %v4659_v33  ;;  %v3351_v28 = vpop.f32.mrb[19].mxu0  ;;  %v2460_v40 = vsel %vm4982_vm14, %v2442_v63, %v4931_v4  ;;  %vm5004_vm2 = vmand %vm2407_vm0, %vm2389_vm15 }
 0x21f   : > { %v2443_v62 = vadd.s32 18, %v4965_v54  ;;  %vm2390_vm3 = vcmp.ne.s32.totalorder %v4988_v32, 0  ;;  %vm2408_vm4 = vcmp.lt.s32.totalorder %v4988_v32, 0  ;;  %v2371_v25 = vmul.u32 18, %v2370_v3 }
 0x220   : > { %v2544_v49 = vadd.f32 %v2543_v35, %v2527_v42  ;;  %v2587_v10 = vmul.f32 %v2921_v41, %v2569_v48  ;;  %2149 = vst [vmem:[%s4719_s10 + $0x48] sm:$0xff] %v3379_v22  ;;  %v2528_v18 = vmul.f32 %v3379_v22, %v2922_v7  ;;  %v2570_v33 = vmul.f32 %v3379_v22, %v3379_v22  ;;  %vm5022_vm6 = vmand %vm2408_vm4, %vm2390_vm3 }
 0x221   : > { %v1251_v16 = vpop.f32.mrb[24].mxu1  ;;  %vm2478_vm5 = vcmp.lt.s32.totalorder %v2460_v40, 16  ;;  %v2925_v59 = vsel %vm4993_vm1, 1.0, %v3891_v2  ;;  %v2444_v43 = vadd.s32 18, %v4988_v32  ;;  %v2372_v44 = vsub.s32 %v4919_v19, %v2371_v25 }
 0x222   : > { %v3206_v6 = vpop.f32.mrb[25].mxu1  ;;  %v2604_v14 = vadd.f32 %v2603_v34, %v2587_v10  ;;  %v2545_v29 = vadd.f32 %v2544_v49, %v2528_v18  ;;  %v2588_v24 = vmul.f32 %v2922_v7, %v2570_v33  ;;  %v2926_v28 = vsel %vm2478_vm5, 1.0, %v3891_v2 }
 0x223   : > { %v1254_v37 = vpop.f32.mrb[26].mxu1  ;;  %v2091_v15 = vpop.f32.mrb[20].mxu0  ;;  %v2462_v33 = vsel %vm5022_vm6, %v2444_v43, %v4988_v32  ;;  %vm2392_vm11 = vcmp.ne.s32.totalorder %v2372_v44, 0  ;;  %vm2410_vm12 = vcmp.lt.s32.totalorder %v2372_v44, 0 }
 0x224   : > { %v3207_v60 = vpop.f32.mrb[27].mxu1  ;;  %v2605_v27 = vadd.f32 %v2604_v14, %v2588_v24  ;;  %v3380_v26 = vadd.f32 %v2091_v15, %v1243_v5  ;;  %v3354_v17 = vpop.f32.mrb[21].mxu0  ;;  %v2360_v5 = vmul.u32 18, %v2359_v55  ;;  %vm2480_vm13 = vcmp.lt.s32.totalorder %v2462_v33, 16  ;;  %vm5048_vm14 = vmand %vm2410_vm12, %vm2392_vm11 }
 0x225   : > { %v2094_v23 = vpop.f32.mrb[22].mxu0  ;;  %v2928_v32 = vsel %vm2480_vm13, 1.0, %v3891_v2 }
 0x226   : > { %2150 = vst [vmem:[%s4719_s10 + $0x50] sm:$0xff] %v3380_v26  ;;  %v2529_v31 = vmul.f32 %v3380_v26, %v2923_v61  ;;  %v2571_v9 = vmul.f32 %v3380_v26, %v3380_v26  ;;  %v3381_v13 = vadd.f32 %v2094_v23, %v1246_v21  ;;  %v3355_v12 = vpop.f32.mrb[23].mxu0  ;;  %v2361_v45 = vsub.s32 %v4888_v57, %v2360_v5 }
 0x227   : > { %v2461_v57 = vsel %vm5004_vm2, %v2443_v62, %v4965_v54 }
 0x228   : > { %v2546_v56 = vadd.f32 %v2545_v29, %v2529_v31  ;;  %v2589_v35 = vmul.f32 %v2923_v61, %v2571_v9  ;;  %2151 = vst [vmem:[%s4719_s10 + $0x58] sm:$0xff] %v3381_v13  ;;  %v2530_v20 = vmul.f32 %v3381_v13, %v2924_v0  ;;  %v2572_v46 = vmul.f32 %v3381_v13, %v3381_v13 }
 0x229   : > { %v1259_v41 = vpop.f32.mrb[28].mxu1  ;;  %vm2391_vm7 = vcmp.ne.s32.totalorder %v2361_v45, 0  ;;  %vm2409_vm8 = vcmp.lt.s32.totalorder %v2361_v45, 0  ;;  %vm5029_vm9 = vcmp.lt.s32.totalorder %v2461_v57, 16 }
 0x22a   : > { %v3210_v21 = vpop.f32.mrb[29].mxu1  ;;  %v2606_v4 = vadd.f32 %v2605_v27, %v2589_v35  ;;  %v2547_v34 = vadd.f32 %v2546_v56, %v2530_v20  ;;  %v2590_v11 = vmul.f32 %v2924_v0, %v2572_v46  ;;  %vm5038_vm10 = vmand %vm2409_vm8, %vm2391_vm7  ;;  %v2927_v60 = vsel %vm5029_vm9, 1.0, %v3891_v2 }
 0x22b   : > { %v1262_v52 = vpop.f32.mrb[30].mxu1  ;;  %v2099_v38 = vpop.f32.mrb[24].mxu0  ;;  %v2446_v27 = vadd.s32 18, %v2372_v44 }
 0x22c   : > { %v3211_v53 = vpop.f32.mrb[31].mxu1  ;;  %v2607_v36 = vadd.f32 %v2606_v4, %v2590_v11  ;;  %v3382_v39 = vadd.f32 %v2099_v38, %v1251_v16  ;;  %v3358_v42 = vpop.f32.mrb[25].mxu0  ;;  %v2445_v16 = vadd.s32 18, %v2361_v45 }
 0x22d   : > { %v2102_v22 = vpop.f32.mrb[26].mxu0  ;;  %v2464_v13 = vsel %vm5048_vm14, %v2446_v27, %v2372_v44 }
 0x22e   : > { %2152 = vst [vmem:[%s4719_s10 + $0x60] sm:$0xff] %v3382_v39  ;;  %v2531_v47 = vmul.f32 %v3382_v39, %v2925_v59  ;;  %v2573_v58 = vmul.f32 %v3382_v39, %v3382_v39  ;;  %v3383_v49 = vadd.f32 %v2102_v22, %v1254_v37  ;;  %v3359_v10 = vpop.f32.mrb[27].mxu0  ;;  %v2463_v30 = vsel %vm5038_vm10, %v2445_v16, %v2361_v45 }
 0x22f   : > { %vm2481_vm15 = vcmp.lt.s32.totalorder %v2463_v30, 16  ;;  %vm2482_vm0 = vcmp.lt.s32.totalorder %v2464_v13, 16 }
 0x230   : > { %v2548_v6 = vadd.f32 %v2547_v34, %v2531_v47  ;;  %v2591_v50 = vmul.f32 %v2925_v59, %v2573_v58  ;;  %2153 = vst [vmem:[%s4719_s10 + $0x68] sm:$0xff] %v3383_v49  ;;  %v2532_v54 = vmul.f32 %v3383_v49, %v2926_v28  ;;  %v2574_v19 = vmul.f32 %v3383_v49, %v3383_v49 }
 0x231   : > { %v1267_v51 = vpop.f32.mrb[32].mxu1  ;;  %v2930_v4 = vsel %vm2482_vm0, 1.0, %v3891_v2 }
 0x232   : > { %v3214_v55 = vpop.f32.mrb[33].mxu1  ;;  %v2608_v29 = vadd.f32 %v2607_v36, %v2591_v50  ;;  %v2549_v24 = vadd.f32 %v2548_v6, %v2532_v54  ;;  %v2592_v37 = vmul.f32 %v2926_v28, %v2574_v19 }
 0x233   : > { %v1270_v15 = vpop.f32.mrb[34].mxu1  ;;  %v2107_v61 = vpop.f32.mrb[28].mxu0 }
 0x234   : > { %v3215_v63 = vpop.f32.mrb[35].mxu1  ;;  %v2609_v26 = vadd.f32 %v2608_v29, %v2592_v37  ;;  %v3384_v17 = vadd.f32 %v2107_v61, %v1259_v41  ;;  %v3362_v0 = vpop.f32.mrb[29].mxu0  ;;  %v2929_v41 = vsel %vm2481_vm15, 1.0, %v3891_v2 }
 0x235   : > { %v2110_v23 = vpop.f32.mrb[30].mxu0 }
 0x236   : > { %2154 = vst [vmem:[%s4719_s10 + $0x70] sm:$0xff] %v3384_v17  ;;  %v2533_v5 = vmul.f32 %v3384_v17, %v2927_v60  ;;  %v2575_v3 = vmul.f32 %v3384_v17, %v3384_v17  ;;  %v3385_v31 = vadd.f32 %v2110_v23, %v1262_v52  ;;  %v3363_v9 = vpop.f32.mrb[31].mxu0 }
 0x238   : > { %v2550_v12 = vadd.f32 %v2549_v24, %v2533_v5  ;;  %v2593_v8 = vmul.f32 %v2927_v60, %v2575_v3  ;;  %2155 = vst [vmem:[%s4719_s10 + $0x78] sm:$0xff] %v3385_v31  ;;  %v2534_v40 = vmul.f32 %v3385_v31, %v2928_v32  ;;  %v2576_v62 = vmul.f32 %v3385_v31, %v3385_v31 }
 0x23a   : > { %v2610_v56 = vadd.f32 %v2609_v26, %v2593_v8  ;;  %v2551_v35 = vadd.f32 %v2550_v12, %v2534_v40  ;;  %v2594_v20 = vmul.f32 %v2928_v32, %v2576_v62 }
 0x23b   : > { %v2115_v46 = vpop.f32.mrb[32].mxu0 }
 0x23c   : > { %v2611_v21 = vadd.f32 %v2610_v56, %v2594_v20  ;;  %v3386_v7 = vadd.f32 %v2115_v46, %v1267_v51  ;;  %v3366_v45 = vpop.f32.mrb[33].mxu0 }
 0x23d   : > { %v2118_v25 = vpop.f32.mrb[34].mxu0 }
 0x23e   : > { %2156 = vst [vmem:[%s4719_s10 + $0x80] sm:$0xff] %v3386_v7  ;;  %v2535_v34 = vmul.f32 %v3386_v7, %v2929_v41  ;;  %v2577_v11 = vmul.f32 %v3386_v7, %v3386_v7  ;;  %v3387_v52 = vadd.f32 %v2118_v25, %v1270_v15  ;;  %v3367_v38 = vpop.f32.mrb[35].mxu0 }
 0x240   : > { %v2552_v59 = vadd.f32 %v2551_v35, %v2535_v34  ;;  %v2595_v53 = vmul.f32 %v2929_v41, %v2577_v11  ;;  %2157 = vst [vmem:[%s4719_s10 + $0x88] sm:$0xff] %v3387_v52  ;;  %v2536_v2 = vmul.f32 %v3387_v52, %v2930_v4  ;;  %v2578_v43 = vmul.f32 %v3387_v52, %v3387_v52 }
 0x241   : > { %3780 = shalt.err (!%p3777_p3)
}
 0x242   : > { %s3781_s5 = scalar_lea.hbm %s5064_s22, 2304  ;;  %s3785_s9 = scalar_lea.hbm %s5183_s2, 9216 }
 0x243   : > { %p3782_p4 = scmp.ne.s32.totalorder %s5064_s22, %s3781_s5  ;;  %p3786_p9 = scmp.lt.u32.totalorder %s5064_s22, %s5183_s2 }
 0x244   : > { %p3787_p10 = scmp.lt.u32.totalorder %s3785_s9, %s3781_s5  ;;  %p3789_p12 = scmp.lt.u32.totalorder %s3781_s5, %s5064_s22 }
 0x245   : > { %p3783_p7 = pnand %p3782_p4, %p3963_p5 }
 0x246   : > { %p3788_p11 = por %p3787_p10, %p3786_p9 }
 0x247   : > { %p3784_p8 = pneg %p3783_p7 }
 0x248   : > { %p3790_p13 = por %p3789_p12, %p3788_p11 }
 0x24a   : > { %p3791_p0 = pnand %p3790_p13, %p3784_p8 }
 0x24c   : > { %3794 = shalt.err (!%p3791_p0)
}
 0x24d   : > { %s3894_s13 = smov 128   ;;  %s3895_s14 = smov 8   ;;  %v2612_v36 = vadd.f32 %v2611_v21, %v2595_v53  ;;  %v2553_v39 = vadd.f32 %v2552_v59, %v2536_v2  ;;  %v2596_v42 = vmul.f32 %v2930_v4, %v2578_v43 }
 0x24e   : > { %3679 = dma.vmem_to_hbm [thread:$0]  (%p3963_p5), %s5067_s12, 2304, %s5064_s22, %s2622_s23, %s3894_s13, %s3894_s13, %s3895_s14  }
 0x24f   : > { %v2554_v57 = vrot.slane %v2553_v39, 4  ;;  %v2613_v48 = vadd.f32 %v2612_v36, %v2596_v42  ;;  %s2626_s27 = sand.u32 1, %s3944_s19   ;;  %s2932_s28 = sshll.u32 %s3944_s19, 4 }
 0x250   : > { %s200_s29 = scalar_lea.vmem [#allocation4], %s4666_s8  ;;  %s206_s12 = scalar_lea.vmem [#allocation6], %s4666_s8 }
 0x251   : > { %v2555_v22 = vadd.f32 %v2554_v57, %v2553_v39  ;;  %v2614_v28 = vrot.slane %v2613_v48, 4  ;;  %s2659_s30 = sshll.u32 %s200_s29, 4  ;;  %s2672_s22 = sshll.u32 %s206_s12, 4  ;;  %s5105_s30 = int_to_ptr.vmem [resolvable:$true] %s2659_s30  ;;  %s5112_s22 = int_to_ptr.vmem [resolvable:$true] %s2672_s22 }
 0x252   : > { %s5103_s6 = scalar_lea.hbm %s5184_s3, %s2932_s28  ;;  %s5110_s9 = scalar_lea.hbm %s5185_s4, %s2932_s28 }
 0x253   : > { %v2615_v44 = vadd.f32 %v2614_v28, %v2613_v48  ;;  %v2556_v47 = vrot.slane %v2555_v22, 2  ;;  %s5114_s10 = scalar_lea.sflag [#allocation5], %s2626_s27  ;;  %s3795_s11 = scalar_lea.vmem %s5105_s30, 16 }
 0x254   : > { %p3796_p1 = scmp.ne.s32.totalorder %s5105_s30, %s3795_s11  ;;  %s3896_s13 = smov [#allocation4]  }
 0x255   : > { %v2557_v58 = vadd.f32 %v2556_v47, %v2555_v22  ;;  %v2616_v49 = vrot.slane %v2615_v44, 2  ;;  %s3799_s14 = sshll.u32 %s3896_s13, 4  ;;  %s3800_s14 = int_to_ptr.vmem [resolvable:$false] %s3799_s14 }
 0x256   : > { %p3797_p2 = pnand %p3796_p1, %p3963_p5  ;;  %s3801_s23 = scalar_lea.vmem %s3800_s14, 32 }
 0x257   : > { %v2558_v10 = vrot.slane %v2557_v58, 1  ;;  %v2617_v18 = vadd.f32 %v2616_v49, %v2615_v44  ;;  %p3802_p4 = scmp.lt.s32.totalorder %s5105_s30, %s3800_s14  ;;  %p3803_p7 = scmp.lt.s32.totalorder %s3801_s23, %s3795_s11 }
 0x258   : > { %p3798_p3 = pneg %p3797_p2 }
 0x259   : > { %v2559_v33 = vadd.f32 %v2558_v10, %v2557_v58  ;;  %v2618_v16 = vrot.slane %v2617_v18, 1  ;;  %p3804_p8 = por %p3803_p7, %p3802_p4 }
 0x25b   : > { %2560 = vst [vmem:[%s200_s29] sm:$0x1] %v2559_v33  ;;  %v2619_v6 = vadd.f32 %v2618_v16, %v2617_v18  ;;  %p3805_p9 = pnand %p3804_p8, %p3798_p3 }
 0x25d   : > { %3808 = shalt.err (!%p3805_p9)
}
 0x25e   : > { %s3809_s27 = scalar_lea.hbm %s5103_s6, 16  ;;  %s3813_s5 = scalar_lea.hbm %s5184_s3, 64 }
 0x25f   : > { %p3810_p10 = scmp.ne.s32.totalorder %s5103_s6, %s3809_s27  ;;  %p3814_p13 = scmp.lt.u32.totalorder %s5103_s6, %s5184_s3 }
 0x260   : > { %p3815_p0 = scmp.lt.u32.totalorder %s3813_s5, %s3809_s27  ;;  %p3817_p2 = scmp.lt.u32.totalorder %s3809_s27, %s5103_s6 }
 0x261   : > { %p3811_p11 = pnand %p3810_p10, %p3963_p5 }
 0x262   : > { %p3816_p1 = por %p3815_p0, %p3814_p13 }
 0x263   : > { %p3812_p12 = pneg %p3811_p11 }
 0x264   : > { %p3818_p3 = por %p3817_p2, %p3816_p1 }
 0x266   : > { %p3819_p4 = pnand %p3818_p3, %p3812_p12 }
 0x268   : > { %3822 = shalt.err (!%p3819_p4)
}
 0x269   : > { %3680 = dma.vmem_to_hbm [thread:$0]  (%p3963_p5), %s5105_s30, 16, %s5103_s6, %s5114_s10   ;;  %2620 = vst [vmem:[%s206_s12] sm:$0x1] %v2619_v6 }
 0x26a   : > { %s3823_s11 = scalar_lea.vmem %s5112_s22, 16  ;;  %s3897_s13 = smov [#allocation6]  }
 0x26b   : > { %p3824_p7 = scmp.ne.s32.totalorder %s5112_s22, %s3823_s11  ;;  %s3827_s14 = sshll.u32 %s3897_s13, 4  ;;  %s3828_s14 = int_to_ptr.vmem [resolvable:$false] %s3827_s14 }
 0x26c   : > { %s3829_s23 = scalar_lea.vmem %s3828_s14, 32  ;;  %p3830_p10 = scmp.lt.s32.totalorder %s5112_s22, %s3828_s14 }
 0x26d   : > { %p3825_p8 = pnand %p3824_p7, %p3963_p5  ;;  %p3831_p11 = scmp.lt.s32.totalorder %s3829_s23, %s3823_s11 }
 0x26f   : > { %p3826_p9 = pneg %p3825_p8  ;;  %p3832_p12 = por %p3831_p11, %p3830_p10 }
 0x271   : > { %p3833_p13 = pnand %p3832_p12, %p3826_p9 }
 0x273   : > { %3836 = shalt.err (!%p3833_p13)
}
 0x274   : > { %s3837_s8 = scalar_lea.hbm %s5110_s9, 16  ;;  %s3841_s6 = scalar_lea.hbm %s5185_s4, 64 }
 0x275   : > { %p3838_p0 = scmp.ne.s32.totalorder %s5110_s9, %s3837_s8  ;;  %p3842_p3 = scmp.lt.u32.totalorder %s5110_s9, %s5185_s4 }
 0x276   : > { %p3843_p4 = scmp.lt.u32.totalorder %s3841_s6, %s3837_s8  ;;  %p3845_p8 = scmp.lt.u32.totalorder %s3837_s8, %s5110_s9 }
 0x277   : > { %p3839_p1 = pnand %p3838_p0, %p3963_p5 }
 0x278   : > { %p3844_p7 = por %p3843_p4, %p3842_p3 }
 0x279   : > { %p3840_p2 = pneg %p3839_p1 }
 0x27a   : > { %p3846_p9 = por %p3845_p8, %p3844_p7 }
 0x27c   : > { %p3847_p10 = pnand %p3846_p9, %p3840_p2 }
 0x27e   : > { %3850 = shalt.err (!%p3847_p10)
}
 0x27f   : > { %3681 = dma.vmem_to_hbm [thread:$0]  (%p3963_p5), %s5112_s22, 16, %s5110_s9, %s5114_s10  }
 0x280 PF: > { %p3695_p11 = scmp.ge.s32.totalorder %s3889_s18, 2  ;;  %s2684_s29 = sand.u32 1, %s3877_s15  }
 0x281   : > { %s2685_s5 = scalar_lea.sflag [#allocation3], %s2684_s29 }
 0x282   : > { %p3686_p12 = pnand %p3695_p11, %p3967_p6 }
 0x284   : > { %3868 = dma.done.wait (!%p3686_p12), %s2685_s5, 2304  }
 0x285   : > { %3870 = vsyncadd (!%p3686_p12), %s2685_s5, 4294964992  ;;  %s2693_s19 = sand.u32 1, %s2784_s20  }
 0x286   : > { %s2694_s7 = scalar_lea.sflag [#allocation5], %s2693_s19 }
 0x287   : > { %3872 = dma.done.wait (!%p3686_p12), %s2694_s7, 32  }
 0x288   : > { %3874 = vsyncadd (!%p3686_p12), %s2694_s7, 4294967264  ;;  %p18_p5 = scmp.ge.s32.totalorder %s3948_s21, 6   ;;  %s5246_s15 = smov %s3881_s16 }
 0x289   : > { %s5247_s16 = smov %s3885_s17  ;;  %s5248_s17 = smov %s3961_s24 }
 0x28a   : > { %s5249_s18 = smov %s3948_s21  ;;  %20 = sbr.rel (!%p18_p5) target bundleno = 5 (0x5), region = 103 }
 0x291   :  { %2706 = vsyncpa [#allocation3], 1 }
 0x292   :  { %2708 = vsyncpa [#allocation3 + $0x1], 1 }
 0x293   :  { %2709 = vsyncpa [#allocation5], 1 }
 0x294   :  { %2711 = vsyncpa [#allocation5 + $0x1], 1 }

</bundles_post_ra>
